<compile_context>
chip_gen: v7x
topology: tpu7x:2x2x1
jax: 0.10.0
libtpu: 0.0.40
codegen_flags: <defaults>
</compile_context>

<pallas_src>
import functools
import math

import jax
import jax.numpy as jnp
from jax import lax
from jax.experimental import pallas as pl
from jax.experimental.pallas import tpu as pltpu


# ------------------------------ fused kernel ---------------------------------

def _attnmil_kernel(x_ref, w1_ref, wv_ref, bv_ref, wu_ref, bu_ref,
                    wwT_ref, bw_ref, wc_ref, bc_ref,
                    out_ref, a_out_ref,
                    m_sc, l_sc, acc_sc,
                    *, n_valid, tile_n, needs_mask):
    i = pl.program_id(0)

    @pl.when(i == 0)
    def _init():
        m_sc[...] = jnp.full_like(m_sc, -jnp.inf)
        l_sc[...] = jnp.zeros_like(l_sc)
        acc_sc[...] = jnp.zeros_like(acc_sc)

    # ---- DimReduction: relu(x @ W1) ----
    x = x_ref[...]                                                        # (tn, F)
    med = jnp.maximum(
        jnp.dot(x, w1_ref[...], preferred_element_type=jnp.float32), 0.0)  # (tn, Di)

    # ---- Gated attention scores ----
    av = jnp.tanh(
        jnp.dot(med, wv_ref[...], preferred_element_type=jnp.float32)
        + bv_ref[...])                                                    # (tn, D)
    zu = jnp.dot(med, wu_ref[...], preferred_element_type=jnp.float32) + bu_ref[...]
    au = 1.0 / (1.0 + jnp.exp(-zu))                                       # sigmoid (EUP exp)
    gated = av * au                                                       # (tn, D)

    # Logits directly in lane-dense (K, tn): WwT (K, D) contracted with gated (tn, D).
    a_t = lax.dot_general(
        wwT_ref[...], gated, (((1,), (1,)), ((), ())),
        preferred_element_type=jnp.float32) + bw_ref[...]                 # (K, tn)
    a_out_ref[...] = a_t.astype(a_out_ref.dtype)                          # pre-softmax A_out tile

    if needs_mask:
        # Padded instance columns must not contribute to the softmax/pooling.
        col = lax.broadcasted_iota(jnp.int32, a_t.shape, 1) + i * tile_n
        a_t = jnp.where(col < n_valid, a_t, jnp.float32(-1e30))

    # ---- Online softmax over N + weighted feature pooling ----
    m_new = jnp.maximum(m_sc[...], jnp.max(a_t, axis=-1, keepdims=True))  # (K, 1)
    alpha = jnp.exp(m_sc[...] - m_new)                                    # (K, 1)
    p = jnp.exp(a_t - m_new)                                              # (K, tn)
    l_sc[...] = alpha * l_sc[...] + jnp.sum(p, axis=-1, keepdims=True)
    acc_sc[...] = alpha * acc_sc[...] + jnp.dot(
        p, med, preferred_element_type=jnp.float32)                       # (K, Di)
    m_sc[...] = m_new

    # ---- Classifier on the pooled bag feature (last step only) ----
    @pl.when(i == pl.num_programs(0) - 1)
    def _finalize():
        afeat = acc_sc[...] / l_sc[...]                                   # (K, Di)
        out_ref[...] = (jnp.dot(afeat, wc_ref[...],
                                preferred_element_type=jnp.float32)
                        + bc_ref[...]).astype(out_ref.dtype)


# ------------------------------ wrapper ---------------------------------------

def _round_up(a, b):
    return (a + b - 1) // b * b


@functools.partial(jax.jit, static_argnames=("tile_n",))
def attnmil_forward(params, x, *, tile_n=512):
    """x: (1, N, feat_d) as in the PyTorch module (forward starts with x = x[0])."""
    xb = x[0]
    N, F = xb.shape
    Di = params["w1"].shape[1]
    D = params["wv"].shape[1]
    K = params["ww"].shape[1]
    C = params["wc"].shape[1]

    # Lane-aligned N tiling; pad up and mask in-kernel for ragged bag sizes.
    tile_n = max(128, _round_up(tile_n, 128))
    tn = min(tile_n, _round_up(N, 128))
    n_pad = _round_up(N, tn)
    needs_mask = (n_pad != N)
    if needs_mask:
        xb = jnp.pad(xb, ((0, n_pad - N), (0, 0)))   # zeros keep med finite
    grid = (n_pad // tn,)

    # Small one-time layout prep (fused under jit).
    wwT = params["ww"].T                      # (K, D) -> rhs-transposed matmul form
    bv2 = params["bv"].reshape(1, D)
    bu2 = params["bu"].reshape(1, D)
    bw2 = params["bw"].reshape(K, 1)
    bc2 = params["bc"].reshape(1, C)

    const = lambda i: (0, 0)
    kernel = functools.partial(_attnmil_kernel, n_valid=N, tile_n=tn,
                               needs_mask=needs_mask)

    outputs, a_out = pl.pallas_call(
        kernel,
        out_shape=(
            jax.ShapeDtypeStruct((K, C), xb.dtype),         # classifier logits
            jax.ShapeDtypeStruct((K, n_pad), jnp.float32),  # pre-softmax attention
        ),
        grid_spec=pltpu.PrefetchScalarGridSpec(
            num_scalar_prefetch=0,
            grid=grid,
            in_specs=[
                pl.BlockSpec((tn, F), lambda i: (i, 0)),   # x tile (only streamed tensor)
                pl.BlockSpec((F, Di), const),              # W1   (VMEM-resident)
                pl.BlockSpec((Di, D), const),              # Wv
                pl.BlockSpec((1, D), const),               # bv
                pl.BlockSpec((Di, D), const),              # Wu
                pl.BlockSpec((1, D), const),               # bu
                pl.BlockSpec((K, D), const),               # Ww^T
                pl.BlockSpec((K, 1), const),               # bw
                pl.BlockSpec((Di, C), const),              # Wc
                pl.BlockSpec((1, C), const),               # bc
            ],
            out_specs=(
                pl.BlockSpec((K, C), lambda i: (0, 0)),    # written on last step only
                pl.BlockSpec((K, tn), lambda i: (0, i)),   # per-tile A_out (lane-dense)
            ),
            scratch_shapes=[
                pltpu.VMEM((K, 1), jnp.float32),   # running max
                pltpu.VMEM((K, 1), jnp.float32),   # running sum(exp)
                pltpu.VMEM((K, Di), jnp.float32),  # weighted-feature accumulator
            ],
        ),
        compiler_params=pltpu.CompilerParams(
            # The single grid axis carries the softmax/pooling reduction.
            dimension_semantics=("arbitrary",),
        ),
    )(xb, params["w1"], params["wv"], bv2, params["wu"], bu2,
      wwT, bw2, params["wc"], bc2)

    return outputs, a_out[None, :, :N]   # (K, n_class), (1, K, N) == A_out.unsqueeze(0)


# ------------------------------ params & reference ----------------------------

def init_params(key, feat_d, d_inner, d_attn, n_class, k_heads=1):
    def linear(k, fan_in, fan_out, bias=True):
        kw, kb = jax.random.split(k)
        bound = 1.0 / math.sqrt(fan_in)
        w = jax.random.uniform(kw, (fan_in, fan_out), jnp.float32, -bound, bound)
        b = (jax.random.uniform(kb, (fan_out,), jnp.float32, -bound, bound)
             if bias else None)
        return w, b

    keys = jax.random.split(key, 5)
    p = {}
    p["w1"], _ = linear(keys[0], feat_d, d_inner, bias=False)   # DimReduction.fc1
    p["wv"], p["bv"] = linear(keys[1], d_inner, d_attn)         # attention_V
    p["wu"], p["bu"] = linear(keys[2], d_inner, d_attn)         # attention_U
    p["ww"], p["bw"] = linear(keys[3], d_attn, k_heads)         # attention_weights
    p["wc"], p["bc"] = linear(keys[4], d_inner, n_class)        # Classifier_1fc.fc
    return p


def attnmil_reference(params, x):
    xb = x[0]
    med = jnp.maximum(xb @ params["w1"], 0.0)
    av = jnp.tanh(med @ params["wv"] + params["bv"])
    au = jax.nn.sigmoid(med @ params["wu"] + params["bu"])
    a = (av * au) @ params["ww"] + params["bw"]     # (N, K)
    a_t = a.T                                       # (K, N)
    p = jax.nn.softmax(a_t, axis=1)
    afeat = p @ med                                 # (K, Di)
    out = afeat @ params["wc"] + params["bc"]       # (K, C)
    return out, a_t[None]


# ------------------------------ demo / check ----------------------------------

if __name__ == "__main__":
    feat_d, d_inner, d_attn, n_class = 256, 128, 128, 4

    key = jax.random.PRNGKey(0)
    kp, kx1, kx2 = jax.random.split(key, 3)
    params = init_params(kp, feat_d, d_inner, d_attn, n_class)

    # Case 1: bag size an exact multiple of the lane tile (fast path, no mask).
    x1 = jax.random.normal(kx1, (1, 256, feat_d), jnp.float32)
    out1, a1 = attnmil_forward(params, x1)
    out1 = jax.block_until_ready(out1)
    a1 = jax.block_until_ready(a1)
    ref_o1, ref_a1 = attnmil_reference(params, x1)
    assert out1.shape == (1, n_class) and a1.shape == (1, 1, 256)
    assert jnp.allclose(out1, ref_o1, atol=1e-4, rtol=1e-4)
    assert jnp.allclose(a1, ref_a1, atol=1e-4, rtol=1e-4)

    # Case 2: ragged bag size (exercises in-kernel padding mask).
    x2 = jax.random.normal(kx2, (1, 200, feat_d), jnp.float32)
    out2, a2 = attnmil_forward(params, x2)
    out2 = jax.block_until_ready(out2)
    a2 = jax.block_until_ready(a2)
    ref_o2, ref_a2 = attnmil_reference(params, x2)
    assert out2.shape == (1, n_class) and a2.shape == (1, 1, 200)
    assert jnp.allclose(out2, ref_o2, atol=1e-4, rtol=1e-4)
    assert jnp.allclose(a2, ref_a2, atol=1e-4, rtol=1e-4)

    print("KERNEL_OK")
</pallas_src>

<mosaic_0001>
module attributes {stable_mosaic.version = 11 : i64} {
  func.func @_attnmil_kernel(%arg0: i32, %arg1: memref<256x256xf32, #tpu.memory_space<vmem>>, %arg2: memref<256x128xf32, #tpu.memory_space<vmem>>, %arg3: memref<128x128xf32, #tpu.memory_space<vmem>>, %arg4: memref<1x128xf32, #tpu.memory_space<vmem>>, %arg5: memref<128x128xf32, #tpu.memory_space<vmem>>, %arg6: memref<1x128xf32, #tpu.memory_space<vmem>>, %arg7: memref<1x128xf32, #tpu.memory_space<vmem>>, %arg8: memref<1x1xf32, #tpu.memory_space<vmem>>, %arg9: memref<128x4xf32, #tpu.memory_space<vmem>>, %arg10: memref<1x4xf32, #tpu.memory_space<vmem>>, %arg11: memref<1x4xf32, #tpu.memory_space<vmem>>, %arg12: memref<1x256xf32, #tpu.memory_space<vmem>>, %arg13: memref<1x1xf32, #tpu.memory_space<vmem>>, %arg14: memref<1x1xf32, #tpu.memory_space<vmem>>, %arg15: memref<1x128xf32, #tpu.memory_space<vmem>>) attributes {dimension_semantics = [#tpu.dimension_semantics<arbitrary>], iteration_bounds = array<i64: 1>, scalar_prefetch = 0 : i64, scratch_operands = 3 : i64, tpu.core_type = #tpu.core_type<tc>, window_params = [{transform_indices = @transform_0, window_bounds = array<i64: 256, 256>}, {pipeline_mode = #tpu.pipeline_mode<synchronous>, transform_indices = @transform_1, window_bounds = array<i64: 256, 128>}, {pipeline_mode = #tpu.pipeline_mode<synchronous>, transform_indices = @transform_2, window_bounds = array<i64: 128, 128>}, {pipeline_mode = #tpu.pipeline_mode<synchronous>, transform_indices = @transform_3, window_bounds = array<i64: 1, 128>}, {pipeline_mode = #tpu.pipeline_mode<synchronous>, transform_indices = @transform_4, window_bounds = array<i64: 128, 128>}, {pipeline_mode = #tpu.pipeline_mode<synchronous>, transform_indices = @transform_5, window_bounds = array<i64: 1, 128>}, {pipeline_mode = #tpu.pipeline_mode<synchronous>, transform_indices = @transform_6, window_bounds = array<i64: 1, 128>}, {pipeline_mode = #tpu.pipeline_mode<synchronous>, transform_indices = @transform_7, window_bounds = array<i64: 1, 1>}, {pipeline_mode = #tpu.pipeline_mode<synchronous>, transform_indices = @transform_8, window_bounds = array<i64: 128, 4>}, {pipeline_mode = #tpu.pipeline_mode<synchronous>, transform_indices = @transform_9, window_bounds = array<i64: 1, 4>}, {pipeline_mode = #tpu.pipeline_mode<synchronous>, transform_indices = @transform_10, window_bounds = array<i64: 1, 4>}, {transform_indices = @transform_11, window_bounds = array<i64: 1, 256>}]} {
    %c0_i32 = arith.constant 0 : i32
    %0 = arith.cmpi eq, %arg0, %c0_i32 : i32
    %1 = arith.extui %0 : i1 to i32
    %c0_i32_0 = arith.constant 0 : i32
    %2 = arith.cmpi ne, %1, %c0_i32_0 : i32
    scf.if %2 {
      %cst_44 = arith.constant 0xFF800000 : f32
      %59 = vector.broadcast %cst_44 : f32 to vector<1x1xf32>
      %c0_45 = arith.constant 0 : index
      %c0_46 = arith.constant 0 : index
      %60 = vector.load %arg13[%c0_45, %c0_46] : memref<1x1xf32, #tpu.memory_space<vmem>>, vector<1x1xf32>
      tpu.vector_store %arg13[%c0_45, %c0_46], %59 {strides = array<i32>} : memref<1x1xf32, #tpu.memory_space<vmem>>, vector<1x1xf32>,
      %cst_47 = arith.constant 0.000000e+00 : f32
      %61 = vector.broadcast %cst_47 : f32 to vector<1x1xf32>
      %c0_48 = arith.constant 0 : index
      %c0_49 = arith.constant 0 : index
      %62 = vector.load %arg14[%c0_48, %c0_49] : memref<1x1xf32, #tpu.memory_space<vmem>>, vector<1x1xf32>
      tpu.vector_store %arg14[%c0_48, %c0_49], %61 {strides = array<i32>} : memref<1x1xf32, #tpu.memory_space<vmem>>, vector<1x1xf32>,
      %cst_50 = arith.constant 0.000000e+00 : f32
      %63 = vector.broadcast %cst_50 : f32 to vector<1x128xf32>
      %c0_51 = arith.constant 0 : index
      %c0_52 = arith.constant 0 : index
      %64 = vector.load %arg15[%c0_51, %c0_52] : memref<1x128xf32, #tpu.memory_space<vmem>>, vector<1x128xf32>
      tpu.vector_store %arg15[%c0_51, %c0_52], %63 {strides = array<i32>} : memref<1x128xf32, #tpu.memory_space<vmem>>, vector<1x128xf32>,
    } else {
    }
    %c0 = arith.constant 0 : index
    %c0_1 = arith.constant 0 : index
    %3 = vector.load %arg1[%c0, %c0_1] : memref<256x256xf32, #tpu.memory_space<vmem>>, vector<256x256xf32>
    %c0_2 = arith.constant 0 : index
    %c0_3 = arith.constant 0 : index
    %4 = vector.load %arg2[%c0_2, %c0_3] : memref<256x128xf32, #tpu.memory_space<vmem>>, vector<256x128xf32>
    %cst = arith.constant dense<0.000000e+00> : vector<256x128xf32>
    %5 = tpu.matmul %3, %4, %cst {dimension_numbers = #tpu.dot_dimension_numbers<[1], [0], [0], [1], [0, 0, 1, 1], [], []>} : vector<256x256xf32>, vector<256x128xf32>, vector<256x128xf32> -> vector<256x128xf32>
    %cst_4 = arith.constant 0.000000e+00 : f32
    %6 = vector.broadcast %cst_4 : f32 to vector<256x128xf32>
    %7 = arith.maximumf %5, %6 : vector<256x128xf32>
    %c0_5 = arith.constant 0 : index
    %c0_6 = arith.constant 0 : index
    %8 = vector.load %arg3[%c0_5, %c0_6] : memref<128x128xf32, #tpu.memory_space<vmem>>, vector<128x128xf32>
    %cst_7 = arith.constant dense<0.000000e+00> : vector<256x128xf32>
    %9 = tpu.matmul %7, %8, %cst_7 {dimension_numbers = #tpu.dot_dimension_numbers<[1], [0], [0], [1], [0, 0, 1, 1], [], []>} : vector<256x128xf32>, vector<128x128xf32>, vector<256x128xf32> -> vector<256x128xf32>
    %c0_8 = arith.constant 0 : index
    %c0_9 = arith.constant 0 : index
    %10 = vector.load %arg4[%c0_8, %c0_9] : memref<1x128xf32, #tpu.memory_space<vmem>>, vector<1x128xf32>
    %11 = vector.broadcast %10 : vector<1x128xf32> to vector<256x128xf32>
    %12 = arith.addf %9, %11 : vector<256x128xf32>
    %13 = math.tanh %12 : vector<256x128xf32>
    %c0_10 = arith.constant 0 : index
    %c0_11 = arith.constant 0 : index
    %14 = vector.load %arg5[%c0_10, %c0_11] : memref<128x128xf32, #tpu.memory_space<vmem>>, vector<128x128xf32>
    %cst_12 = arith.constant dense<0.000000e+00> : vector<256x128xf32>
    %15 = tpu.matmul %7, %14, %cst_12 {dimension_numbers = #tpu.dot_dimension_numbers<[1], [0], [0], [1], [0, 0, 1, 1], [], []>} : vector<256x128xf32>, vector<128x128xf32>, vector<256x128xf32> -> vector<256x128xf32>
    %c0_13 = arith.constant 0 : index
    %c0_14 = arith.constant 0 : index
    %16 = vector.load %arg6[%c0_13, %c0_14] : memref<1x128xf32, #tpu.memory_space<vmem>>, vector<1x128xf32>
    %17 = vector.broadcast %16 : vector<1x128xf32> to vector<256x128xf32>
    %18 = arith.addf %15, %17 : vector<256x128xf32>
    %cst_15 = arith.constant 0.000000e+00 : f32
    %19 = vector.broadcast %cst_15 : f32 to vector<256x128xf32>
    %20 = arith.subf %19, %18 : vector<256x128xf32>
    %21 = math.exp %20 : vector<256x128xf32>
    %cst_16 = arith.constant 1.000000e+00 : f32
    %22 = vector.broadcast %cst_16 : f32 to vector<256x128xf32>
    %23 = arith.addf %22, %21 : vector<256x128xf32>
    %cst_17 = arith.constant 1.000000e+00 : f32
    %24 = vector.broadcast %cst_17 : f32 to vector<256x128xf32>
    %25 = arith.divf %24, %23 : vector<256x128xf32>
    %26 = arith.mulf %13, %25 : vector<256x128xf32>
    %c0_18 = arith.constant 0 : index
    %c0_19 = arith.constant 0 : index
    %27 = vector.load %arg7[%c0_18, %c0_19] : memref<1x128xf32, #tpu.memory_space<vmem>>, vector<1x128xf32>
    %cst_20 = arith.constant dense<0.000000e+00> : vector<1x256xf32>
    %28 = tpu.matmul %27, %26, %cst_20 {dimension_numbers = #tpu.dot_dimension_numbers<[1], [1], [0], [0], [0, 0, 1, 0], [], []>} : vector<1x128xf32>, vector<256x128xf32>, vector<1x256xf32> -> vector<1x256xf32>
    %c0_21 = arith.constant 0 : index
    %c0_22 = arith.constant 0 : index
    %29 = vector.load %arg8[%c0_21, %c0_22] : memref<1x1xf32, #tpu.memory_space<vmem>>, vector<1x1xf32>
    %30 = vector.broadcast %29 : vector<1x1xf32> to vector<1x256xf32>
    %31 = arith.addf %28, %30 : vector<1x256xf32>
    %c0_23 = arith.constant 0 : index
    %c0_24 = arith.constant 0 : index
    %32 = vector.load %arg12[%c0_23, %c0_24] : memref<1x256xf32, #tpu.memory_space<vmem>>, vector<1x256xf32>
    tpu.vector_store %arg12[%c0_23, %c0_24], %31 {strides = array<i32>} : memref<1x256xf32, #tpu.memory_space<vmem>>, vector<1x256xf32>,
    %c0_25 = arith.constant 0 : index
    %c0_26 = arith.constant 0 : index
    %33 = vector.load %arg13[%c0_25, %c0_26] : memref<1x1xf32, #tpu.memory_space<vmem>>, vector<1x1xf32>
    %cst_27 = arith.constant dense<0xFF800000> : vector<1xf32>
    %34 = vector.multi_reduction <maximumf>, %31, %cst_27 [1] : vector<1x256xf32> to vector<1xf32>
    %35 = vector.shape_cast %34 : vector<1xf32> to vector<1x1xf32>
    %36 = arith.maximumf %33, %35 : vector<1x1xf32>
    %c0_28 = arith.constant 0 : index
    %c0_29 = arith.constant 0 : index
    %37 = vector.load %arg13[%c0_28, %c0_29] : memref<1x1xf32, #tpu.memory_space<vmem>>, vector<1x1xf32>
    %38 = arith.subf %37, %36 : vector<1x1xf32>
    %39 = math.exp %38 : vector<1x1xf32>
    %40 = vector.broadcast %36 : vector<1x1xf32> to vector<1x256xf32>
    %41 = arith.subf %31, %40 : vector<1x256xf32>
    %42 = math.exp %41 : vector<1x256xf32>
    %c0_30 = arith.constant 0 : index
    %c0_31 = arith.constant 0 : index
    %43 = vector.load %arg14[%c0_30, %c0_31] : memref<1x1xf32, #tpu.memory_space<vmem>>, vector<1x1xf32>
    %44 = arith.mulf %39, %43 : vector<1x1xf32>
    %cst_32 = arith.constant dense<0.000000e+00> : vector<1xf32>
    %45 = vector.multi_reduction <add>, %42, %cst_32 [1] : vector<1x256xf32> to vector<1xf32>
    %46 = vector.shape_cast %45 : vector<1xf32> to vector<1x1xf32>
    %47 = arith.addf %44, %46 : vector<1x1xf32>
    %c0_33 = arith.constant 0 : index
    %c0_34 = arith.constant 0 : index
    %48 = vector.load %arg14[%c0_33, %c0_34] : memref<1x1xf32, #tpu.memory_space<vmem>>, vector<1x1xf32>
    tpu.vector_store %arg14[%c0_33, %c0_34], %47 {strides = array<i32>} : memref<1x1xf32, #tpu.memory_space<vmem>>, vector<1x1xf32>,
    %c0_35 = arith.constant 0 : index
    %c0_36 = arith.constant 0 : index
    %49 = vector.load %arg15[%c0_35, %c0_36] : memref<1x128xf32, #tpu.memory_space<vmem>>, vector<1x128xf32>
    %50 = vector.broadcast %39 : vector<1x1xf32> to vector<1x128xf32>
    %51 = arith.mulf %50, %49 : vector<1x128xf32>
    %cst_37 = arith.constant dense<0.000000e+00> : vector<1x128xf32>
    %52 = tpu.matmul %42, %7, %cst_37 {dimension_numbers = #tpu.dot_dimension_numbers<[1], [0], [0], [1], [0, 0, 1, 1], [], []>} : vector<1x256xf32>, vector<256x128xf32>, vector<1x128xf32> -> vector<1x128xf32>
    %53 = arith.addf %51, %52 : vector<1x128xf32>
    %c0_38 = arith.constant 0 : index
    %c0_39 = arith.constant 0 : index
    %54 = vector.load %arg15[%c0_38, %c0_39] : memref<1x128xf32, #tpu.memory_space<vmem>>, vector<1x128xf32>
    tpu.vector_store %arg15[%c0_38, %c0_39], %53 {strides = array<i32>} : memref<1x128xf32, #tpu.memory_space<vmem>>, vector<1x128xf32>,
    %c0_40 = arith.constant 0 : index
    %c0_41 = arith.constant 0 : index
    %55 = vector.load %arg13[%c0_40, %c0_41] : memref<1x1xf32, #tpu.memory_space<vmem>>, vector<1x1xf32>
    tpu.vector_store %arg13[%c0_40, %c0_41], %36 {strides = array<i32>} : memref<1x1xf32, #tpu.memory_space<vmem>>, vector<1x1xf32>,
    %c0_i32_42 = arith.constant 0 : i32
    %56 = arith.cmpi eq, %arg0, %c0_i32_42 : i32
    %57 = arith.extui %56 : i1 to i32
    %c0_i32_43 = arith.constant 0 : i32
    %58 = arith.cmpi ne, %57, %c0_i32_43 : i32
    scf.if %58 {
      %c0_44 = arith.constant 0 : index
      %c0_45 = arith.constant 0 : index
      %59 = vector.load %arg15[%c0_44, %c0_45] : memref<1x128xf32, #tpu.memory_space<vmem>>, vector<1x128xf32>
      %c0_46 = arith.constant 0 : index
      %c0_47 = arith.constant 0 : index
      %60 = vector.load %arg14[%c0_46, %c0_47] : memref<1x1xf32, #tpu.memory_space<vmem>>, vector<1x1xf32>
      %61 = vector.broadcast %60 : vector<1x1xf32> to vector<1x128xf32>
      %62 = arith.divf %59, %61 : vector<1x128xf32>
      %c0_48 = arith.constant 0 : index
      %c0_49 = arith.constant 0 : index
      %63 = vector.load %arg9[%c0_48, %c0_49] : memref<128x4xf32, #tpu.memory_space<vmem>>, vector<128x4xf32>
      %cst_50 = arith.constant dense<0.000000e+00> : vector<1x4xf32>
      %64 = tpu.matmul %62, %63, %cst_50 {dimension_numbers = #tpu.dot_dimension_numbers<[1], [0], [0], [1], [0, 0, 1, 1], [], []>} : vector<1x128xf32>, vector<128x4xf32>, vector<1x4xf32> -> vector<1x4xf32>
      %c0_51 = arith.constant 0 : index
      %c0_52 = arith.constant 0 : index
      %65 = vector.load %arg10[%c0_51, %c0_52] : memref<1x4xf32, #tpu.memory_space<vmem>>, vector<1x4xf32>
      %66 = arith.addf %64, %65 : vector<1x4xf32>
      %c0_53 = arith.constant 0 : index
      %c0_54 = arith.constant 0 : index
      %67 = vector.load %arg11[%c0_53, %c0_54] : memref<1x4xf32, #tpu.memory_space<vmem>>, vector<1x4xf32>
      tpu.vector_store %arg11[%c0_53, %c0_54], %66 {strides = array<i32>} : memref<1x4xf32, #tpu.memory_space<vmem>>, vector<1x4xf32>,
    } else {
    }
    return
  }
  func.func @transform_0(%arg0: i32) -> (i32, i32) {
    %c0_i32 = arith.constant 0 : i32
    %c0_i32_0 = arith.constant 0 : i32
    return %arg0, %c0_i32 : i32, i32
  }
  func.func @transform_1(%arg0: i32) -> (i32, i32) {
    %c0_i32 = arith.constant 0 : i32
    %c0_i32_0 = arith.constant 0 : i32
    %c0_i32_1 = arith.constant 0 : i32
    return %c0_i32, %c0_i32_0 : i32, i32
  }
  func.func @transform_2(%arg0: i32) -> (i32, i32) {
    %c0_i32 = arith.constant 0 : i32
    %c0_i32_0 = arith.constant 0 : i32
    %c0_i32_1 = arith.constant 0 : i32
    return %c0_i32, %c0_i32_0 : i32, i32
  }
  func.func @transform_3(%arg0: i32) -> (i32, i32) {
    %c0_i32 = arith.constant 0 : i32
    %c0_i32_0 = arith.constant 0 : i32
    %c0_i32_1 = arith.constant 0 : i32
    return %c0_i32, %c0_i32_0 : i32, i32
  }
  func.func @transform_4(%arg0: i32) -> (i32, i32) {
    %c0_i32 = arith.constant 0 : i32
    %c0_i32_0 = arith.constant 0 : i32
    %c0_i32_1 = arith.constant 0 : i32
    return %c0_i32, %c0_i32_0 : i32, i32
  }
  func.func @transform_5(%arg0: i32) -> (i32, i32) {
    %c0_i32 = arith.constant 0 : i32
    %c0_i32_0 = arith.constant 0 : i32
    %c0_i32_1 = arith.constant 0 : i32
    return %c0_i32, %c0_i32_0 : i32, i32
  }
  func.func @transform_6(%arg0: i32) -> (i32, i32) {
    %c0_i32 = arith.constant 0 : i32
    %c0_i32_0 = arith.constant 0 : i32
    %c0_i32_1 = arith.constant 0 : i32
    return %c0_i32, %c0_i32_0 : i32, i32
  }
  func.func @transform_7(%arg0: i32) -> (i32, i32) {
    %c0_i32 = arith.constant 0 : i32
    %c0_i32_0 = arith.constant 0 : i32
    %c0_i32_1 = arith.constant 0 : i32
    return %c0_i32, %c0_i32_0 : i32, i32
  }
  func.func @transform_8(%arg0: i32) -> (i32, i32) {
    %c0_i32 = arith.constant 0 : i32
    %c0_i32_0 = arith.constant 0 : i32
    %c0_i32_1 = arith.constant 0 : i32
    return %c0_i32, %c0_i32_0 : i32, i32
  }
  func.func @transform_9(%arg0: i32) -> (i32, i32) {
    %c0_i32 = arith.constant 0 : i32
    %c0_i32_0 = arith.constant 0 : i32
    %c0_i32_1 = arith.constant 0 : i32
    return %c0_i32, %c0_i32_0 : i32, i32
  }
  func.func @transform_10(%arg0: i32) -> (i32, i32) {
    %c0_i32 = arith.constant 0 : i32
    %c0_i32_0 = arith.constant 0 : i32
    %c0_i32_1 = arith.constant 0 : i32
    return %c0_i32, %c0_i32_0 : i32, i32
  }
  func.func @transform_11(%arg0: i32) -> (i32, i32) {
    %c0_i32 = arith.constant 0 : i32
    %c0_i32_0 = arith.constant 0 : i32
    return %c0_i32, %arg0 : i32, i32
  }
}

</mosaic_0001>

<bundles_post_ra>
// kernel: attnmil_forward.1
= control target key start
LH: loop header
LB: loop body
LE: loop exit
PB: predicated region body
PF: predicated region fallthrough
CT: control target
= control target key end

     0   :  { %s3150_s0 = inlined_call_operand.hbm [shape: f32[256,256], index: 0, kind: input, shape index: {}]   ;;  %s3151_s1 = inlined_call_operand.hbm [shape: f32[256,128], index: 1, kind: input, shape index: {}]   ;;  %s3152_s2 = inlined_call_operand.vmem [shape: f32[128,128], index: 2, kind: input, shape index: {}]   ;;  %s3153_s3 = inlined_call_operand.vmem [shape: f32[1,128], index: 3, kind: input, shape index: {}]   ;;  %s3154_s4 = inlined_call_operand.hbm [shape: f32[128,128], index: 4, kind: input, shape index: {}]   ;;  %s3155_s5 = inlined_call_operand.vmem [shape: f32[1,128], index: 5, kind: input, shape index: {}]   ;;  %s3156_s6 = inlined_call_operand.vmem [shape: f32[1,128], index: 6, kind: input, shape index: {}]   ;;  %s3157_s7 = inlined_call_operand.<no memory space> [shape: f32[1,1], index: 7, kind: input, shape index: {}]   ;;  %s3158_s8 = inlined_call_operand.vmem [shape: f32[128,4], index: 8, kind: input, shape index: {}]   ;;  %s3159_s9 = inlined_call_operand.vmem [shape: f32[1,4], index: 9, kind: input, shape index: {}]   ;;  %s3160_s10 = inlined_call_operand.hbm [shape: f32[1,4], index: 10, kind: output, shape index: {0}]   ;;  %s3161_s11 = inlined_call_operand.hbm [shape: f32[1,256], index: 11, kind: output, shape index: {1}]  }
   0x1   :  { %v17_v0 = vstv %s3157_s7 }
   0x2   :  { %18 = vst [vmem:[#allocation5] sm:$0x1] %v17_v0 }
   0x3   :  { %19 = vsyncpa [#allocation7], 0 }
   0x4   :  { %20 = vsyncpa [#allocation10], 0 }
   0x5   :  { %21 = vsyncpa [#allocation8], 0 }
   0x6   :  { %22 = vsyncpa [#allocation14], 0  ;;  %s2469_s19 = smov [#allocation9]   ;;  %s2351_s23 = scalar_lea.hbm %s3151_s1, 4096 }
   0x7   :  { %s40_s20 = sshll.u32 %s2469_s19, 4  ;;  %p2352_p0 = scmp.ne.s32.totalorder %s3151_s1, %s2351_s23  ;;  %s41_s20 = int_to_ptr.vmem [resolvable:$true] %s40_s20 }
   0x8   :  { %p2355_p1 = scmp.lt.u32.totalorder %s2351_s23, %s3151_s1 }
   0xa   :  { %p2357_p2 = pnand %p2355_p1, %p2352_p0 }
   0xc   :  { %2360 = shalt.err (!%p2357_p2)
}
   0xd   :  { %s2361_s7 = scalar_lea.vmem %s41_s20, 4096  ;;  %p2366_p4 = scmp.lt.s32.totalorder %s41_s20, %s41_s20 }
   0xe   :  { %p2362_p3 = scmp.ne.s32.totalorder %s41_s20, %s2361_s7  ;;  %p2367_p5 = scmp.lt.s32.totalorder %s2361_s7, %s2361_s7 }
  0x10   :  { %p2368_p6 = por %p2367_p5, %p2366_p4 }
  0x12   :  { %p2369_p7 = pnand %p2368_p6, %p2362_p3 }
  0x14   :  { %2372 = shalt.err (!%p2369_p7)
}
  0x15   :  { %s2470_s28 = smov 128   ;;  %s2471_s29 = smov 8  }
  0x16   :  { %46 = dma.hbm_to_vmem [thread:$0]  %s3151_s1, 4096, %s41_s20, [#allocation10], %s2470_s28, %s2470_s28, %s2471_s29  }
  0x17   :  { %s2472_s13 = smov [#allocation6]   ;;  %s2373_s17 = scalar_lea.hbm %s3150_s0, 8192 }
  0x18   :  { %s28_s14 = sshll.u32 %s2472_s13, 4  ;;  %p2374_p8 = scmp.ne.s32.totalorder %s3150_s0, %s2373_s17  ;;  %s29_s14 = int_to_ptr.vmem [resolvable:$true] %s28_s14 }
  0x19   :  { %p2377_p9 = scmp.lt.u32.totalorder %s2373_s17, %s3150_s0 }
  0x1b   :  { %p2379_p10 = pnand %p2377_p9, %p2374_p8 }
  0x1d   :  { %2382 = shalt.err (!%p2379_p10)
}
  0x1e   :  { %s2383_s23 = scalar_lea.vmem %s29_s14, 8192  ;;  %p2388_p12 = scmp.lt.s32.totalorder %s29_s14, %s29_s14 }
  0x1f   :  { %p2384_p11 = scmp.ne.s32.totalorder %s29_s14, %s2383_s23  ;;  %p2389_p13 = scmp.lt.s32.totalorder %s2383_s23, %s2383_s23 }
  0x21   :  { %p2390_p0 = por %p2389_p13, %p2388_p12 }
  0x23   :  { %p2391_p1 = pnand %p2390_p0, %p2384_p11 }
  0x25   :  { %2394 = shalt.err (!%p2391_p1)
}
  0x26   :  { %s2473_s1 = smov 256   ;;  %s2474_s20 = smov 16  }
  0x27   :  { %34 = dma.hbm_to_vmem [thread:$0]  %s3150_s0, 8192, %s29_s14, [#allocation7], %s2473_s1, %s2473_s1, %s2474_s20  }
  0x28   :  { %s2475_s26 = smov [#allocation11]   ;;  %s2395_s12 = scalar_lea.hbm %s3154_s4, 2048 }
  0x29   :  { %s56_s27 = sshll.u32 %s2475_s26, 4  ;;  %p2396_p2 = scmp.ne.s32.totalorder %s3154_s4, %s2395_s12  ;;  %s57_s27 = int_to_ptr.vmem [resolvable:$true] %s56_s27 }
  0x2a   :  { %p2399_p3 = scmp.lt.u32.totalorder %s2395_s12, %s3154_s4 }
  0x2c   :  { %p2401_p4 = pnand %p2399_p3, %p2396_p2 }
  0x2e   :  { %2404 = shalt.err (!%p2401_p4)
}
  0x2f   :  { %s2405_s18 = scalar_lea.vmem %s57_s27, 2048  ;;  %p2410_p6 = scmp.lt.s32.totalorder %s57_s27, %s57_s27 }
  0x30   :  { %p2406_p5 = scmp.ne.s32.totalorder %s57_s27, %s2405_s18  ;;  %p2411_p7 = scmp.lt.s32.totalorder %s2405_s18, %s2405_s18 }
  0x32   :  { %p2412_p8 = por %p2411_p7, %p2410_p6 }
  0x34   :  { %p2413_p9 = pnand %p2412_p8, %p2406_p5 }
  0x36   :  { %2416 = shalt.err (!%p2413_p9)
}
  0x37   :  { %62 = dma.hbm_to_vmem [thread:$0]  %s3154_s4, 2048, %s57_s27, [#allocation10], %s2470_s28, %s2470_s28, %s2471_s29  }
  0x38   :  { %2461 = dma.done.wait [#allocation7], 8192  }
  0x39   :  { %2462 = vsyncadd [#allocation7], 4294959104 }
  0x3a   :  { %2463 = dma.done.wait [#allocation10], 6144  }
  0x3b   :  { %2464 = vsyncadd [#allocation10], 4294961152  ;;  %v2476_v1 = vmov 0.0|0.0   ;;  %v154_v2 = vld [vmem:[#allocation9] sm:$0xff]  ;;  %v155_v3 = vld [vmem:[#allocation9 + $0x8] sm:$0xff]  ;;  %vm86_vm0 = vcmask 0  }
  0x3c   :  { %1934 = vmatprep.subr.bf16.mxu0 %v2476_v1  ;;  %v156_v4 = vld [vmem:[#allocation9 + $0x10] sm:$0xff]  ;;  %v1935_v5 = vpack.c.bf16 %v155_v3, %v154_v2  ;;  %v157_v6 = vld [vmem:[#allocation9 + $0x18] sm:$0xff]  ;;  %v158_v8 = vld [vmem:[#allocation9 + $0x20] sm:$0xff]  ;;  %vm1301_vm1 = vcmask 1040384   ;;  %vm2481_vm3 = vmmov 0  }
  0x3d   :  { %v1938_v7 = vpack.c.bf16 %v157_v6, %v156_v4  ;;  %v159_v9 = vld [vmem:[#allocation9 + $0x28] sm:$0xff]  ;;  %v160_v11 = vld [vmem:[#allocation9 + $0x30] sm:$0xff]  ;;  %v161_v12 = vld [vmem:[#allocation9 + $0x38] sm:$0xff] }
  0x3e   :  { %1936 = vmatpush1.bf16.msra.mxu0 %v1935_v5  ;;  %v1941_v10 = vpack.c.bf16 %v159_v9, %v158_v8  ;;  %v91_v13 = vld [vmem:[#allocation6 + $0x8] sm:$0xff]  ;;  %v1944_v14 = vpack.c.bf16 %v161_v12, %v160_v11  ;;  %v162_v15 = vld [vmem:[#allocation9 + $0x40] sm:$0xff]  ;;  %v164_v18 = vld [vmem:[#allocation9 + $0x50] sm:$0xff] }
  0x3f   :  { %1937 = vmatprep.subr.bf16.mxu0 %v2476_v1  ;;  %250 = vmatprep.mubr.f32.mxu0 %v91_v13  ;;  %v163_v16 = vld [vmem:[#allocation9 + $0x48] sm:$0xff]  ;;  %v165_v19 = vld [vmem:[#allocation9 + $0x58] sm:$0xff]  ;;  %v166_v21 = vld [vmem:[#allocation9 + $0x60] sm:$0xff] }
  0x40   :  { %v1947_v17 = vpack.c.bf16 %v163_v16, %v162_v15  ;;  %v1950_v20 = vpack.c.bf16 %v165_v19, %v164_v18  ;;  %v167_v22 = vld [vmem:[#allocation9 + $0x68] sm:$0xff]  ;;  %v168_v24 = vld [vmem:[#allocation9 + $0x70] sm:$0xff]  ;;  %v169_v25 = vld [vmem:[#allocation9 + $0x78] sm:$0xff] }
  0x41   :  { %v1953_v23 = vpack.c.bf16 %v167_v22, %v166_v21  ;;  %v1956_v26 = vpack.c.bf16 %v169_v25, %v168_v24  ;;  %v170_v27 = vld [vmem:[#allocation9 + $0x80] sm:$0xff]  ;;  %v171_v28 = vld [vmem:[#allocation9 + $0x88] sm:$0xff]  ;;  %v172_v30 = vld [vmem:[#allocation9 + $0x90] sm:$0xff] }
  0x42   :  { %1939 = vmatpush1.bf16.msra.mxu0 %v1938_v7  ;;  %v1959_v29 = vpack.c.bf16 %v171_v28, %v170_v27  ;;  %v173_v31 = vld [vmem:[#allocation9 + $0x98] sm:$0xff]  ;;  %v174_v33 = vld [vmem:[#allocation9 + $0xa0] sm:$0xff]  ;;  %v175_v34 = vld [vmem:[#allocation9 + $0xa8] sm:$0xff] }
  0x43   :  { %1940 = vmatprep.subr.bf16.mxu0 %v2476_v1  ;;  %v1962_v32 = vpack.c.bf16 %v173_v31, %v172_v30  ;;  %v1965_v35 = vpack.c.bf16 %v175_v34, %v174_v33  ;;  %v176_v36 = vld [vmem:[#allocation9 + $0xb0] sm:$0xff]  ;;  %v177_v37 = vld [vmem:[#allocation9 + $0xb8] sm:$0xff]  ;;  %v178_v39 = vld [vmem:[#allocation9 + $0xc0] sm:$0xff] }
  0x44   :  { %v1968_v38 = vpack.c.bf16 %v177_v37, %v176_v36  ;;  %v179_v40 = vld [vmem:[#allocation9 + $0xc8] sm:$0xff]  ;;  %v180_v42 = vld [vmem:[#allocation9 + $0xd0] sm:$0xff]  ;;  %v181_v43 = vld [vmem:[#allocation9 + $0xd8] sm:$0xff] }
  0x45   :  { %v1971_v41 = vpack.c.bf16 %v179_v40, %v178_v39  ;;  %v1974_v44 = vpack.c.bf16 %v181_v43, %v180_v42  ;;  %v182_v45 = vld [vmem:[#allocation9 + $0xe0] sm:$0xff]  ;;  %v183_v46 = vld [vmem:[#allocation9 + $0xe8] sm:$0xff]  ;;  %v184_v48 = vld [vmem:[#allocation9 + $0xf0] sm:$0xff] }
  0x46   :  { %1942 = vmatpush1.bf16.msra.mxu0 %v1941_v10  ;;  %v1977_v47 = vpack.c.bf16 %v183_v46, %v182_v45  ;;  %v185_v49 = vld [vmem:[#allocation9 + $0xf8] sm:$0xff]  ;;  %v444_v52 = vld [vmem:[%s3152_s2 + $0x8] sm:$0xff]  ;;  %v445_v53 = vld [vmem:[%s3152_s2 + $0x10] sm:$0xff] }
  0x47   :  { %1943 = vmatprep.subr.bf16.mxu0 %v2476_v1  ;;  %v1980_v50 = vpack.c.bf16 %v185_v49, %v184_v48  ;;  %v443_v51 = vld [vmem:[%s3152_s2] sm:$0xff]  ;;  %v446_v56 = vld [vmem:[%s3152_s2 + $0x18] sm:$0xff]  ;;  %v448_v60 = vld [vmem:[%s3152_s2 + $0x28] sm:$0xff] }
  0x48   :  { %v90_v54 = vld [vmem:[#allocation6] sm:$0xff]  ;;  %v1982_v55 = vpack.c.bf16 %v444_v52, %v443_v51  ;;  %v93_v57 = vld [vmem:[#allocation6 + $0x18] sm:$0xff]  ;;  %v1986_v58 = vpack.c.bf16 %v446_v56, %v445_v53  ;;  %v92_v61 = vld [vmem:[#allocation6 + $0x10] sm:$0xff] }
  0x49   :  { %v447_v59 = vld [vmem:[%s3152_s2 + $0x20] sm:$0xff]  ;;  %v95_v63 = vld [vmem:[#allocation6 + $0x28] sm:$0xff]  ;;  %v450_v2 = vld [vmem:[%s3152_s2 + $0x38] sm:$0xff] }
  0x4a   :  { %1945 = vmatpush1.bf16.msra.mxu0 %v1944_v14  ;;  %1983 = vmatprep.subr.bf16.mxu1 %v1982_v55  ;;  %v1990_v62 = vpack.c.bf16 %v448_v60, %v447_v59  ;;  %v449_v0 = vld [vmem:[%s3152_s2 + $0x30] sm:$0xff]  ;;  %v94_v3 = vld [vmem:[#allocation6 + $0x20] sm:$0xff]  ;;  %v97_v5 = vld [vmem:[#allocation6 + $0x38] sm:$0xff] }
  0x4b   :  { %1946 = vmatprep.subr.bf16.mxu0 %v2476_v1  ;;  %1985 = vmatpush3.bf16.msra.mxu1 %v1982_v55  ;;  %v1994_v4 = vpack.c.bf16 %v450_v2, %v449_v0  ;;  %v451_v6 = vld [vmem:[%s3152_s2 + $0x40] sm:$0xff]  ;;  %v452_v7 = vld [vmem:[%s3152_s2 + $0x48] sm:$0xff]  ;;  %v96_v8 = vld [vmem:[#allocation6 + $0x30] sm:$0xff] }
  0x4c   :  { %1987 = vmatprep.subr.bf16.mxu1 %v1986_v58  ;;  %v1998_v9 = vpack.c.bf16 %v452_v7, %v451_v6  ;;  %v99_v10 = vld [vmem:[#allocation6 + $0x48] sm:$0xff]  ;;  %v454_v12 = vld [vmem:[%s3152_s2 + $0x58] sm:$0xff]  ;;  %v98_v13 = vld [vmem:[#allocation6 + $0x40] sm:$0xff] }
  0x4d   :  { %v453_v11 = vld [vmem:[%s3152_s2 + $0x50] sm:$0xff]  ;;  %v101_v15 = vld [vmem:[#allocation6 + $0x58] sm:$0xff]  ;;  %v102_v21 = vld [vmem:[#allocation6 + $0x60] sm:$0xff] }
  0x4e   :  { %1948 = vmatpush1.bf16.msra.mxu0 %v1947_v17  ;;  %v2002_v14 = vpack.c.bf16 %v454_v12, %v453_v11  ;;  %v455_v16 = vld [vmem:[%s3152_s2 + $0x60] sm:$0xff]  ;;  %v456_v17 = vld [vmem:[%s3152_s2 + $0x68] sm:$0xff]  ;;  %v100_v18 = vld [vmem:[#allocation6 + $0x50] sm:$0xff] }
  0x4f   :  { %1949 = vmatprep.subr.bf16.mxu0 %v2476_v1  ;;  %1989 = vmatpush3.bf16.msra.mxu1 %v1986_v58  ;;  %v2006_v19 = vpack.c.bf16 %v456_v17, %v455_v16  ;;  %v105_v22 = vld [vmem:[#allocation6 + $0x78] sm:$0xff]  ;;  %v107_v24 = vld [vmem:[#allocation6 + $0x88] sm:$0xff]  ;;  %v106_v25 = vld [vmem:[#allocation6 + $0x80] sm:$0xff] }
  0x50   :  { %1991 = vmatprep.subr.bf16.mxu1 %v1990_v62  ;;  %v108_v27 = vld [vmem:[#allocation6 + $0x90] sm:$0xff]  ;;  %v111_v28 = vld [vmem:[#allocation6 + $0xa8] sm:$0xff]  ;;  %v113_v30 = vld [vmem:[#allocation6 + $0xb8] sm:$0xff] }
  0x51   :  { %v112_v31 = vld [vmem:[#allocation6 + $0xb0] sm:$0xff]  ;;  %v114_v33 = vld [vmem:[#allocation6 + $0xc0] sm:$0xff]  ;;  %v117_v34 = vld [vmem:[#allocation6 + $0xd8] sm:$0xff] }
  0x52   :  { %1951 = vmatpush1.bf16.msra.mxu0 %v1950_v20  ;;  %v103_v20 = vld [vmem:[#allocation6 + $0x68] sm:$0xff]  ;;  %v118_v37 = vld [vmem:[#allocation6 + $0xe0] sm:$0xff]  ;;  %v120_v39 = vld [vmem:[#allocation6 + $0xf0] sm:$0xff] }
  0x53   :  { %1952 = vmatprep.subr.bf16.mxu0 %v2476_v1  ;;  %1993 = vmatpush3.bf16.msra.mxu1 %v1990_v62  ;;  %v119_v36 = vld [vmem:[#allocation6 + $0xe8] sm:$0xff]  ;;  %v125_v42 = vld [vmem:[#allocation6 + $0x118] sm:$0xff]  ;;  %v124_v43 = vld [vmem:[#allocation6 + $0x110] sm:$0xff] }
  0x54   :  { %1995 = vmatprep.subr.bf16.mxu1 %v1994_v4  ;;  %v123_v40 = vld [vmem:[#allocation6 + $0x108] sm:$0xff]  ;;  %v126_v45 = vld [vmem:[#allocation6 + $0x120] sm:$0xff]  ;;  %v129_v46 = vld [vmem:[#allocation6 + $0x138] sm:$0xff] }
  0x55   :  { %v131_v48 = vld [vmem:[#allocation6 + $0x148] sm:$0xff]  ;;  %v130_v49 = vld [vmem:[#allocation6 + $0x140] sm:$0xff]  ;;  %v132_v51 = vld [vmem:[#allocation6 + $0x150] sm:$0xff] }
  0x56   :  { %1954 = vmatpush1.bf16.msra.mxu0 %v1953_v23  ;;  %v104_v23 = vld [vmem:[#allocation6 + $0x70] sm:$0xff]  ;;  %v135_v52 = vld [vmem:[#allocation6 + $0x168] sm:$0xff]  ;;  %v134_v56 = vld [vmem:[#allocation6 + $0x160] sm:$0xff] }
  0x57   :  { %1955 = vmatprep.subr.bf16.mxu0 %v2476_v1  ;;  %1997 = vmatpush3.bf16.msra.mxu1 %v1994_v4  ;;  %v457_v53 = vld [vmem:[%s3152_s2 + $0x70] sm:$0xff]  ;;  %v138_v60 = vld [vmem:[#allocation6 + $0x180] sm:$0xff]  ;;  %v145_v2 = vld [vmem:[#allocation6 + $0x1b8] sm:$0xff] }
  0x58   :  { %1999 = vmatprep.subr.bf16.mxu1 %v1998_v9  ;;  %v136_v58 = vld [vmem:[#allocation6 + $0x170] sm:$0xff]  ;;  %v139_v59 = vld [vmem:[#allocation6 + $0x188] sm:$0xff]  ;;  %v142_v0 = vld [vmem:[#allocation6 + $0x1a0] sm:$0xff] }
  0x59   :  { %v140_v62 = vld [vmem:[#allocation6 + $0x190] sm:$0xff]  ;;  %v147_v4 = vld [vmem:[#allocation6 + $0x1c8] sm:$0xff]  ;;  %v149_v6 = vld [vmem:[#allocation6 + $0x1d8] sm:$0xff] }
  0x5a   :  { %1957 = vmatpush1.bf16.msra.mxu0 %v1956_v26  ;;  %v109_v26 = vld [vmem:[#allocation6 + $0x98] sm:$0xff]  ;;  %v148_v7 = vld [vmem:[#allocation6 + $0x1d0] sm:$0xff]  ;;  %v723_v12 = vld [vmem:[#allocation11] sm:$0xff] }
  0x5b   :  { %1958 = vmatprep.subr.bf16.mxu0 %v2476_v1  ;;  %2001 = vmatpush3.bf16.msra.mxu1 %v1998_v9  ;;  %v150_v9 = vld [vmem:[#allocation6 + $0x1e0] sm:$0xff]  ;;  %v152_v11 = vld [vmem:[#allocation6 + $0x1f0] sm:$0xff] }
  0x5c   :  { %2003 = vmatprep.subr.bf16.mxu1 %v2002_v14 }
  0x5e   :  { %1960 = vmatpush1.bf16.msra.mxu0 %v1959_v29  ;;  %v110_v29 = vld [vmem:[#allocation6 + $0xa0] sm:$0xff] }
  0x5f   :  { %1961 = vmatprep.subr.bf16.mxu0 %v2476_v1  ;;  %2005 = vmatpush3.bf16.msra.mxu1 %v2002_v14 }
  0x60   :  { %2007 = vmatprep.subr.bf16.mxu1 %v2006_v19 }
  0x62   :  { %1963 = vmatpush1.bf16.msra.mxu0 %v1962_v32  ;;  %v115_v32 = vld [vmem:[#allocation6 + $0xc8] sm:$0xff] }
  0x63   :  { %1964 = vmatprep.subr.bf16.mxu0 %v2476_v1  ;;  %2009 = vmatpush3.bf16.msra.mxu1 %v2006_v19  ;;  %v726_v19 = vld [vmem:[#allocation11 + $0x18] sm:$0xff] }
  0x66   :  { %1966 = vmatpush1.bf16.msra.mxu0 %v1965_v35  ;;  %v116_v35 = vld [vmem:[#allocation6 + $0xd0] sm:$0xff] }
  0x67   :  { %1967 = vmatprep.subr.bf16.mxu0 %v2476_v1 }
  0x6a   :  { %1969 = vmatpush1.bf16.msra.mxu0 %v1968_v38  ;;  %v121_v38 = vld [vmem:[#allocation6 + $0xf8] sm:$0xff] }
  0x6b   :  { %1970 = vmatprep.subr.bf16.mxu0 %v2476_v1 }
  0x6e   :  { %1972 = vmatpush1.bf16.msra.mxu0 %v1971_v41  ;;  %v122_v41 = vld [vmem:[#allocation6 + $0x100] sm:$0xff] }
  0x6f   :  { %1973 = vmatprep.subr.bf16.mxu0 %v2476_v1 }
  0x72   :  { %1975 = vmatpush1.bf16.msra.mxu0 %v1974_v44  ;;  %v127_v44 = vld [vmem:[#allocation6 + $0x128] sm:$0xff] }
  0x73   :  { %1976 = vmatprep.subr.bf16.mxu0 %v2476_v1 }
  0x76   :  { %1978 = vmatpush1.bf16.msra.mxu0 %v1977_v47  ;;  %v128_v47 = vld [vmem:[#allocation6 + $0x130] sm:$0xff] }
  0x77   :  { %1979 = vmatprep.subr.bf16.mxu0 %v2476_v1 }
  0x7a   :  { %1981 = vmatpush1.bf16.msra.mxu0 %v1980_v50  ;;  %v133_v50 = vld [vmem:[#allocation6 + $0x158] sm:$0xff] }
  0x7d   :  { %251 = vmatmul.mubr.f32.vlgmr.msra.gmra.mrb[0].mxu0 %v90_v54  ;;  %v458_v54 = vld [vmem:[%s3152_s2 + $0x78] sm:$0xff] }
  0x7e   :  { %255 = vmatprep.mubr.f32.mxu0 %v93_v57  ;;  %v2010_v55 = vpack.c.bf16 %v458_v54, %v457_v53  ;;  %v137_v57 = vld [vmem:[#allocation6 + $0x178] sm:$0xff]  ;;  %v737_v54 = vld [vmem:[#allocation11 + $0x70] sm:$0xff] }
  0x80   :  { %2011 = vmatprep.subr.bf16.mxu1 %v2010_v55 }
  0x81   :  { %256 = vmatmul.mubr.f32.gmra.mrb[2].mxu0 %v92_v61  ;;  %2013 = vmatpush3.bf16.msra.mxu1 %v2010_v55  ;;  %v141_v61 = vld [vmem:[#allocation6 + $0x198] sm:$0xff] }
  0x82   :  { %260 = vmatprep.mubr.f32.mxu0 %v95_v63  ;;  %v143_v63 = vld [vmem:[#allocation6 + $0x1a8] sm:$0xff]  ;;  %v738_v55 = vld [vmem:[#allocation11 + $0x78] sm:$0xff] }
  0x85   :  { %261 = vmatmul.mubr.f32.gmra.mrb[4].mxu0 %v94_v3  ;;  %v144_v3 = vld [vmem:[#allocation6 + $0x1b0] sm:$0xff] }
  0x86   :  { %265 = vmatprep.mubr.f32.mxu0 %v97_v5  ;;  %v146_v5 = vld [vmem:[#allocation6 + $0x1c0] sm:$0xff] }
  0x89   :  { %266 = vmatmul.mubr.f32.gmra.mrb[6].mxu0 %v96_v8  ;;  %v151_v8 = vld [vmem:[#allocation6 + $0x1e8] sm:$0xff] }
  0x8a   :  { %270 = vmatprep.mubr.f32.mxu0 %v99_v10  ;;  %v153_v10 = vld [vmem:[#allocation6 + $0x1f8] sm:$0xff] }
  0x8d   :  { %271 = vmatmul.mubr.f32.gmra.mrb[8].mxu0 %v98_v13  ;;  %v724_v13 = vld [vmem:[#allocation11 + $0x8] sm:$0xff] }
  0x8e   :  { %275 = vmatprep.mubr.f32.mxu0 %v101_v15  ;;  %v2014_v14 = vpack.c.bf16 %v724_v13, %v723_v12 }
  0x90   :  { %2015 = vmatprep.subr.bf16.mxu1 %v2014_v14 }
  0x91   :  { %276 = vmatmul.mubr.f32.gmra.mrb[10].mxu0 %v100_v18  ;;  %v725_v18 = vld [vmem:[#allocation11 + $0x10] sm:$0xff] }
  0x92   :  { %280 = vmatprep.mubr.f32.mxu0 %v103_v20 }
  0x95   :  { %281 = vmatmul.mubr.f32.gmra.mrb[12].mxu0 %v102_v21 }
  0x96   :  { %285 = vmatprep.mubr.f32.mxu0 %v105_v22 }
  0x99   :  { %286 = vmatmul.mubr.f32.gmra.mrb[14].mxu0 %v104_v23  ;;  %v2018_v23 = vpack.c.bf16 %v726_v19, %v725_v18 }
  0x9a   :  { %290 = vmatprep.mubr.f32.mxu0 %v107_v24  ;;  %v727_v24 = vld [vmem:[#allocation11 + $0x20] sm:$0xff] }
  0x9d   :  { %291 = vmatmul.mubr.f32.gmra.mrb[16].mxu0 %v106_v25  ;;  %v728_v25 = vld [vmem:[#allocation11 + $0x28] sm:$0xff] }
  0x9e   :  { %295 = vmatprep.mubr.f32.mxu0 %v109_v26 }
  0xa1   :  { %296 = vmatmul.mubr.f32.gmra.mrb[18].mxu0 %v108_v27 }
  0xa2   :  { %300 = vmatprep.mubr.f32.mxu0 %v111_v28 }
  0xa5   :  { %301 = vmatmul.mubr.f32.gmra.mrb[20].mxu0 %v110_v29  ;;  %v2022_v29 = vpack.c.bf16 %v728_v25, %v727_v24 }
  0xa6   :  { %305 = vmatprep.mubr.f32.mxu0 %v113_v30  ;;  %v729_v30 = vld [vmem:[#allocation11 + $0x30] sm:$0xff] }
  0xa9   :  { %306 = vmatmul.mubr.f32.gmra.mrb[22].mxu0 %v112_v31  ;;  %v730_v31 = vld [vmem:[#allocation11 + $0x38] sm:$0xff] }
  0xaa   :  { %310 = vmatprep.mubr.f32.mxu0 %v115_v32 }
  0xad   :  { %311 = vmatmul.mubr.f32.gmra.mrb[24].mxu0 %v114_v33 }
  0xae   :  { %315 = vmatprep.mubr.f32.mxu0 %v117_v34 }
  0xb1   :  { %316 = vmatmul.mubr.f32.gmra.mrb[26].mxu0 %v116_v35  ;;  %v2026_v35 = vpack.c.bf16 %v730_v31, %v729_v30 }
  0xb2   :  { %320 = vmatprep.mubr.f32.mxu0 %v119_v36  ;;  %v731_v36 = vld [vmem:[#allocation11 + $0x40] sm:$0xff] }
  0xb5   :  { %321 = vmatmul.mubr.f32.gmra.mrb[28].mxu0 %v118_v37  ;;  %v732_v37 = vld [vmem:[#allocation11 + $0x48] sm:$0xff] }
  0xb6   :  { %325 = vmatprep.mubr.f32.mxu0 %v121_v38 }
  0xb9   :  { %326 = vmatmul.mubr.f32.gmra.mrb[30].mxu0 %v120_v39 }
  0xba   :  { %330 = vmatprep.mubr.f32.mxu0 %v123_v40 }
  0xbd   :  { %331 = vmatmul.mubr.f32.gmra.mrb[32].mxu0 %v122_v41  ;;  %v2030_v41 = vpack.c.bf16 %v732_v37, %v731_v36 }
  0xbe   :  { %335 = vmatprep.mubr.f32.mxu0 %v125_v42  ;;  %v733_v42 = vld [vmem:[#allocation11 + $0x50] sm:$0xff] }
  0xc1   :  { %336 = vmatmul.mubr.f32.gmra.mrb[34].mxu0 %v124_v43  ;;  %v734_v43 = vld [vmem:[#allocation11 + $0x58] sm:$0xff] }
  0xc2   :  { %340 = vmatprep.mubr.f32.mxu0 %v127_v44 }
  0xc5   :  { %341 = vmatmul.mubr.f32.gmra.mrb[36].mxu0 %v126_v45 }
  0xc6   :  { %345 = vmatprep.mubr.f32.mxu0 %v129_v46 }
  0xc9   :  { %346 = vmatmul.mubr.f32.gmra.mrb[38].mxu0 %v128_v47  ;;  %v2034_v47 = vpack.c.bf16 %v734_v43, %v733_v42 }
  0xca   :  { %350 = vmatprep.mubr.f32.mxu0 %v131_v48  ;;  %v735_v48 = vld [vmem:[#allocation11 + $0x60] sm:$0xff] }
  0xcd   :  { %351 = vmatmul.mubr.f32.gmra.mrb[40].mxu0 %v130_v49  ;;  %v736_v49 = vld [vmem:[#allocation11 + $0x68] sm:$0xff] }
  0xce   :  { %355 = vmatprep.mubr.f32.mxu0 %v133_v50  ;;  %v2038_v53 = vpack.c.bf16 %v736_v49, %v735_v48 }
  0xd1   :  { %356 = vmatmul.mubr.f32.gmra.mrb[42].mxu0 %v132_v51 }
  0xd2   :  { %360 = vmatprep.mubr.f32.mxu0 %v135_v52 }
  0xd5   :  { %361 = vmatmul.mubr.f32.gmra.mrb[44].mxu0 %v134_v56 }
  0xd6   :  { %365 = vmatprep.mubr.f32.mxu0 %v137_v57 }
  0xd9   :  { %366 = vmatmul.mubr.f32.gmra.mrb[46].mxu0 %v136_v58 }
  0xda   :  { %370 = vmatprep.mubr.f32.mxu0 %v139_v59  ;;  %v2042_v59 = vpack.c.bf16 %v738_v55, %v737_v54 }
  0xdd   :  { %371 = vmatmul.mubr.f32.gmra.mrb[48].mxu0 %v138_v60 }
  0xde   :  { %375 = vmatprep.mubr.f32.mxu0 %v141_v61 }
  0xe1   :  { %376 = vmatmul.mubr.f32.gmra.mrb[50].mxu0 %v140_v62 }
  0xe2   :  { %380 = vmatprep.mubr.f32.mxu0 %v143_v63 }
  0xe5   :  { %381 = vmatmul.mubr.f32.gmra.mrb[52].mxu0 %v142_v0 }
  0xe6   :  { %385 = vmatprep.mubr.f32.mxu0 %v145_v2 }
  0xe9   :  { %386 = vmatmul.mubr.f32.gmra.mrb[54].mxu0 %v144_v3 }
  0xea   :  { %390 = vmatprep.mubr.f32.mxu0 %v147_v4 }
  0xed   :  { %391 = vmatmul.mubr.f32.gmra.mrb[56].mxu0 %v146_v5 }
  0xee   :  { %395 = vmatprep.mubr.f32.mxu0 %v149_v6 }
  0xf1   :  { %396 = vmatmul.mubr.f32.gmra.mrb[58].mxu0 %v148_v7 }
  0xf2   :  { %400 = vmatprep.mubr.f32.mxu0 %v151_v8 }
  0xf5   :  { %401 = vmatmul.mubr.f32.gmra.mrb[60].mxu0 %v150_v9 }
  0xf6   :  { %405 = vmatprep.mubr.f32.mxu0 %v153_v10 }
  0xf9   :  { %406 = vmatmul.mubr.f32.gmra.mrb[62].mxu0 %v152_v11 }
 0x150   :  { %v252_v15 = vpop.f32.mrb[0].mxu0 }
 0x151   :  { %v2653_v16 = vmax.f32 %v252_v15, 0.0  ;;  %v254_v17 = vpop.f32.mrb[1].mxu0 }
 0x153   :  { %1771 = vmatprep.mubr.f32.mxu1 %v2653_v16 }
 0x154   :  { %v257_v20 = vpop.f32.mrb[2].mxu0 }
 0x155   :  { %v2656_v21 = vmax.f32 %v257_v20, 0.0  ;;  %v259_v22 = vpop.f32.mrb[3].mxu0 }
 0x157   :  { %1772 = vmatmul.mubr.f32.vlgmr.msra.gmra.mrb[0].mxu1 %v2656_v21  ;;  %v2080_v31 = vpack.c.bf16 %v2656_v21, %v2653_v16 }
 0x158   :  { %v262_v26 = vpop.f32.mrb[4].mxu0  ;;  %2017 = vmatpush3.bf16.msra.mxu1 %v2014_v14 }
 0x159   :  { %v2659_v27 = vmax.f32 %v262_v26, 0.0  ;;  %v264_v28 = vpop.f32.mrb[5].mxu0  ;;  %2019 = vmatprep.subr.bf16.mxu1 %v2018_v23 }
 0x15b   :  { %1774 = vmatprep.mubr.f32.mxu1 %v2659_v27 }
 0x15c   :  { %v267_v32 = vpop.f32.mrb[6].mxu0  ;;  %2021 = vmatpush3.bf16.msra.mxu1 %v2018_v23 }
 0x15d   :  { %v2662_v33 = vmax.f32 %v267_v32, 0.0  ;;  %v269_v34 = vpop.f32.mrb[7].mxu0  ;;  %2023 = vmatprep.subr.bf16.mxu1 %v2022_v29 }
 0x15f   :  { %1775 = vmatmul.mubr.f32.gmra.mrb[2].mxu1 %v2662_v33 }
 0x160   :  { %v272_v38 = vpop.f32.mrb[8].mxu0  ;;  %2025 = vmatpush3.bf16.msra.mxu1 %v2022_v29 }
 0x161   :  { %v2665_v39 = vmax.f32 %v272_v38, 0.0  ;;  %v274_v40 = vpop.f32.mrb[9].mxu0  ;;  %2027 = vmatprep.subr.bf16.mxu1 %v2026_v35 }
 0x163   :  { %1777 = vmatprep.mubr.f32.mxu1 %v2665_v39 }
 0x164   :  { %v277_v44 = vpop.f32.mrb[10].mxu0  ;;  %2029 = vmatpush3.bf16.msra.mxu1 %v2026_v35 }
 0x165   :  { %v2668_v45 = vmax.f32 %v277_v44, 0.0  ;;  %v279_v46 = vpop.f32.mrb[11].mxu0  ;;  %2031 = vmatprep.subr.bf16.mxu1 %v2030_v41 }
 0x167   :  { %1778 = vmatmul.mubr.f32.gmra.mrb[4].mxu1 %v2668_v45 }
 0x168   :  { %v282_v50 = vpop.f32.mrb[12].mxu0  ;;  %2033 = vmatpush3.bf16.msra.mxu1 %v2030_v41  ;;  %v2084_v41 = vpack.c.bf16 %v2662_v33, %v2659_v27 }
 0x169   :  { %v2671_v51 = vmax.f32 %v282_v50, 0.0  ;;  %v284_v52 = vpop.f32.mrb[13].mxu0  ;;  %2035 = vmatprep.subr.bf16.mxu1 %v2034_v47  ;;  %v2088_v50 = vpack.c.bf16 %v2668_v45, %v2665_v39 }
 0x16b   :  { %1780 = vmatprep.mubr.f32.mxu1 %v2671_v51 }
 0x16c   :  { %v287_v56 = vpop.f32.mrb[14].mxu0  ;;  %2037 = vmatpush3.bf16.msra.mxu1 %v2034_v47 }
 0x16d   :  { %v2674_v57 = vmax.f32 %v287_v56, 0.0  ;;  %v289_v58 = vpop.f32.mrb[15].mxu0  ;;  %2039 = vmatprep.subr.bf16.mxu1 %v2038_v53 }
 0x16f   :  { %1781 = vmatmul.mubr.f32.gmra.mrb[6].mxu1 %v2674_v57 }
 0x170   :  { %v292_v60 = vpop.f32.mrb[16].mxu0  ;;  %2041 = vmatpush3.bf16.msra.mxu1 %v2038_v53 }
 0x171   :  { %v2677_v61 = vmax.f32 %v292_v60, 0.0  ;;  %v294_v62 = vpop.f32.mrb[17].mxu0  ;;  %2043 = vmatprep.subr.bf16.mxu1 %v2042_v59  ;;  %v2092_v60 = vpack.c.bf16 %v2674_v57, %v2671_v51 }
 0x173   :  { %1783 = vmatprep.mubr.f32.mxu1 %v2677_v61 }
 0x174   :  { %v297_v63 = vpop.f32.mrb[18].mxu0  ;;  %2045 = vmatpush3.bf16.msra.mxu1 %v2042_v59 }
 0x175   :  { %v2680_v0 = vmax.f32 %v297_v63, 0.0  ;;  %v299_v2 = vpop.f32.mrb[19].mxu0 }
 0x177   :  { %1784 = vmatmul.mubr.f32.gmra.mrb[8].mxu1 %v2680_v0 }
 0x178   :  { %v302_v3 = vpop.f32.mrb[20].mxu0 }
 0x179   :  { %v2683_v4 = vmax.f32 %v302_v3, 0.0  ;;  %v304_v5 = vpop.f32.mrb[21].mxu0 }
 0x17b   :  { %1786 = vmatprep.mubr.f32.mxu1 %v2683_v4 }
 0x17c   :  { %v307_v6 = vpop.f32.mrb[22].mxu0 }
 0x17d   :  { %v2686_v7 = vmax.f32 %v307_v6, 0.0  ;;  %v309_v8 = vpop.f32.mrb[23].mxu0 }
 0x17f   :  { %1787 = vmatmul.mubr.f32.gmra.mrb[10].mxu1 %v2686_v7 }
 0x180   :  { %v312_v9 = vpop.f32.mrb[24].mxu0 }
 0x181   :  { %v2689_v10 = vmax.f32 %v312_v9, 0.0  ;;  %v314_v11 = vpop.f32.mrb[25].mxu0  ;;  %v2096_v9 = vpack.c.bf16 %v2680_v0, %v2677_v61 }
 0x183   :  { %1789 = vmatprep.mubr.f32.mxu1 %v2689_v10 }
 0x184   :  { %v317_v12 = vpop.f32.mrb[26].mxu0 }
 0x185   :  { %v2692_v13 = vmax.f32 %v317_v12, 0.0  ;;  %v319_v14 = vpop.f32.mrb[27].mxu0 }
 0x187   :  { %1790 = vmatmul.mubr.f32.gmra.mrb[12].mxu1 %v2692_v13 }
 0x188   :  { %v322_v15 = vpop.f32.mrb[28].mxu0 }
 0x189   :  { %v2695_v17 = vmax.f32 %v322_v15, 0.0  ;;  %v324_v18 = vpop.f32.mrb[29].mxu0 }
 0x18b   :  { %1792 = vmatprep.mubr.f32.mxu1 %v2695_v17 }
 0x18c   :  { %v327_v19 = vpop.f32.mrb[30].mxu0 }
 0x18d   :  { %v2698_v20 = vmax.f32 %v327_v19, 0.0  ;;  %v329_v22 = vpop.f32.mrb[31].mxu0 }
 0x18f   :  { %1793 = vmatmul.mubr.f32.gmra.mrb[14].mxu1 %v2698_v20 }
 0x190   :  { %v332_v23 = vpop.f32.mrb[32].mxu0 }
 0x191   :  { %v2701_v24 = vmax.f32 %v332_v23, 0.0  ;;  %v334_v25 = vpop.f32.mrb[33].mxu0  ;;  %v2100_v23 = vpack.c.bf16 %v2686_v7, %v2683_v4 }
 0x193   :  { %1795 = vmatprep.mubr.f32.mxu1 %v2701_v24 }
 0x194   :  { %v337_v26 = vpop.f32.mrb[34].mxu0 }
 0x195   :  { %v2704_v28 = vmax.f32 %v337_v26, 0.0  ;;  %v339_v29 = vpop.f32.mrb[35].mxu0 }
 0x197   :  { %1796 = vmatmul.mubr.f32.gmra.mrb[16].mxu1 %v2704_v28  ;;  %v2078_v30 = vpack.c.bf16 %v2704_v28, %v2701_v24 }
 0x198   :  { %v342_v32 = vpop.f32.mrb[36].mxu0 }
 0x199   :  { %v2711_v34 = vmax.f32 %v342_v32, 0.0  ;;  %v344_v35 = vpop.f32.mrb[37].mxu0  ;;  %2079 = vmatprep.subr.bf16.mxu0 %v2078_v30 }
 0x19a   :  { %2081 = vmatpush3.bf16.msra.mxu0 %v2080_v31 }
 0x19b   :  { %1798 = vmatprep.mubr.f32.mxu1 %v2711_v34 }
 0x19c   :  { %v347_v36 = vpop.f32.mrb[38].mxu0 }
 0x19d   :  { %v2714_v37 = vmax.f32 %v347_v36, 0.0  ;;  %v349_v38 = vpop.f32.mrb[39].mxu0  ;;  %v2104_v36 = vpack.c.bf16 %v2692_v13, %v2689_v10 }
 0x19f   :  { %1799 = vmatmul.mubr.f32.gmra.mrb[18].mxu1 %v2714_v37  ;;  %v2082_v40 = vpack.c.bf16 %v2714_v37, %v2711_v34 }
 0x1a0   :  { %v352_v42 = vpop.f32.mrb[40].mxu0 }
 0x1a1   :  { %v2721_v43 = vmax.f32 %v352_v42, 0.0  ;;  %v354_v44 = vpop.f32.mrb[41].mxu0  ;;  %2083 = vmatprep.subr.bf16.mxu0 %v2082_v40 }
 0x1a2   :  { %2085 = vmatpush3.bf16.msra.mxu0 %v2084_v41 }
 0x1a3   :  { %1801 = vmatprep.mubr.f32.mxu1 %v2721_v43 }
 0x1a4   :  { %v357_v46 = vpop.f32.mrb[42].mxu0 }
 0x1a5   :  { %v2724_v47 = vmax.f32 %v357_v46, 0.0  ;;  %v359_v48 = vpop.f32.mrb[43].mxu0 }
 0x1a7   :  { %1802 = vmatmul.mubr.f32.gmra.mrb[20].mxu1 %v2724_v47  ;;  %v2086_v49 = vpack.c.bf16 %v2724_v47, %v2721_v43 }
 0x1a8   :  { %v362_v52 = vpop.f32.mrb[44].mxu0 }
 0x1a9   :  { %v2731_v53 = vmax.f32 %v362_v52, 0.0  ;;  %v364_v54 = vpop.f32.mrb[45].mxu0  ;;  %2087 = vmatprep.subr.bf16.mxu0 %v2086_v49  ;;  %v2108_v49 = vpack.c.bf16 %v2698_v20, %v2695_v17 }
 0x1aa   :  { %2089 = vmatpush3.bf16.msra.mxu0 %v2088_v50 }
 0x1ab   :  { %1804 = vmatprep.mubr.f32.mxu1 %v2731_v53 }
 0x1ac   :  { %v367_v55 = vpop.f32.mrb[46].mxu0 }
 0x1ad   :  { %v2734_v56 = vmax.f32 %v367_v55, 0.0  ;;  %v369_v58 = vpop.f32.mrb[47].mxu0  ;;  %v2796_v55 = vld [vmem:[%s3153_s3] ss:$0 sm:$0xff] }
 0x1af   :  { %1805 = vmatmul.mubr.f32.gmra.mrb[22].mxu1 %v2734_v56  ;;  %v2090_v59 = vpack.c.bf16 %v2734_v56, %v2731_v53 }
 0x1b0   :  { %v372_v62 = vpop.f32.mrb[48].mxu0 }
 0x1b1   :  { %v2741_v63 = vmax.f32 %v372_v62, 0.0  ;;  %v374_v2 = vpop.f32.mrb[49].mxu0  ;;  %2091 = vmatprep.subr.bf16.mxu0 %v2090_v59 }
 0x1b2   :  { %2093 = vmatpush3.bf16.msra.mxu0 %v2092_v60 }
 0x1b3   :  { %1807 = vmatprep.mubr.f32.mxu1 %v2741_v63 }
 0x1b4   :  { %v377_v3 = vpop.f32.mrb[50].mxu0 }
 0x1b5   :  { %v2744_v5 = vmax.f32 %v377_v3, 0.0  ;;  %v379_v6 = vpop.f32.mrb[51].mxu0 }
 0x1b7   :  { %1808 = vmatmul.mubr.f32.gmra.mrb[24].mxu1 %v2744_v5  ;;  %v2094_v8 = vpack.c.bf16 %v2744_v5, %v2741_v63 }
 0x1b8   :  { %v382_v11 = vpop.f32.mrb[52].mxu0 }
 0x1b9   :  { %v437_v12 = vmax.f32 %v382_v11, 0.0  ;;  %v384_v14 = vpop.f32.mrb[53].mxu0  ;;  %2095 = vmatprep.subr.bf16.mxu0 %v2094_v8 }
 0x1ba   :  { %2097 = vmatpush3.bf16.msra.mxu0 %v2096_v9 }
 0x1bb   :  { %1810 = vmatprep.mubr.f32.mxu1 %v437_v12 }
 0x1bc   :  { %v387_v15 = vpop.f32.mrb[54].mxu0 }
 0x1bd   :  { %v438_v18 = vmax.f32 %v387_v15, 0.0  ;;  %v389_v19 = vpop.f32.mrb[55].mxu0 }
 0x1bf   :  { %1811 = vmatmul.mubr.f32.gmra.mrb[26].mxu1 %v438_v18  ;;  %v2098_v22 = vpack.c.bf16 %v438_v18, %v437_v12 }
 0x1c0   :  { %v392_v25 = vpop.f32.mrb[56].mxu0 }
 0x1c1   :  { %v439_v26 = vmax.f32 %v392_v25, 0.0  ;;  %v394_v29 = vpop.f32.mrb[57].mxu0  ;;  %2099 = vmatprep.subr.bf16.mxu0 %v2098_v22 }
 0x1c2   :  { %2101 = vmatpush3.bf16.msra.mxu0 %v2100_v23 }
 0x1c3   :  { %1813 = vmatprep.mubr.f32.mxu1 %v439_v26 }
 0x1c4   :  { %v397_v30 = vpop.f32.mrb[58].mxu0 }
 0x1c5   :  { %v440_v31 = vmax.f32 %v397_v30, 0.0  ;;  %v399_v32 = vpop.f32.mrb[59].mxu0 }
 0x1c7   :  { %1814 = vmatmul.mubr.f32.gmra.mrb[28].mxu1 %v440_v31  ;;  %v2102_v35 = vpack.c.bf16 %v440_v31, %v439_v26 }
 0x1c8   :  { %v402_v38 = vpop.f32.mrb[60].mxu0 }
 0x1c9   :  { %v441_v40 = vmax.f32 %v402_v38, 0.0  ;;  %v404_v41 = vpop.f32.mrb[61].mxu0  ;;  %2103 = vmatprep.subr.bf16.mxu0 %v2102_v35  ;;  %v2839_v38 = vld [vmem:[%s3155_s5] ss:$0 sm:$0xff] }
 0x1ca   :  { %2105 = vmatpush3.bf16.msra.mxu0 %v2104_v36 }
 0x1cb   :  { %1816 = vmatprep.mubr.f32.mxu1 %v441_v40 }
 0x1cc   :  { %v407_v42 = vpop.f32.mrb[62].mxu0 }
 0x1cd   :  { %v442_v44 = vmax.f32 %v407_v42, 0.0  ;;  %v409_v46 = vpop.f32.mrb[63].mxu0  ;;  %v2847_v42 = vld [vmem:[%s3156_s6] sm:$0x1] }
 0x1cf   :  { %1817 = vmatmul.mubr.f32.gmra.mrb[30].mxu1 %v442_v44  ;;  %v2106_v48 = vpack.c.bf16 %v442_v44, %v441_v40 }
 0x1d0   :  { %1851 = vmatprep.mubr.f32.mxu1 %v2653_v16 }
 0x1d1   :  { %2107 = vmatprep.subr.bf16.mxu0 %v2106_v48 }
 0x1d2   :  { %2109 = vmatpush3.bf16.msra.mxu0 %v2108_v49 }
 0x1d3   :  { %1852 = vmatmul.mubr.f32.vlgmr.msra.gmra.mrb[32].mxu1 %v2656_v21 }
 0x1d4   :  { %1854 = vmatprep.mubr.f32.mxu1 %v2659_v27 }
 0x1d7   :  { %1855 = vmatmul.mubr.f32.gmra.mrb[34].mxu1 %v2662_v33 }
 0x1d8   :  { %1857 = vmatprep.mubr.f32.mxu1 %v2665_v39 }
 0x1db   :  { %1858 = vmatmul.mubr.f32.gmra.mrb[36].mxu1 %v2668_v45 }
 0x1dc   :  { %1860 = vmatprep.mubr.f32.mxu1 %v2671_v51 }
 0x1df   :  { %1861 = vmatmul.mubr.f32.gmra.mrb[38].mxu1 %v2674_v57 }
 0x1e0   :  { %1863 = vmatprep.mubr.f32.mxu1 %v2677_v61 }
 0x1e3   :  { %1864 = vmatmul.mubr.f32.gmra.mrb[40].mxu1 %v2680_v0 }
 0x1e4   :  { %1866 = vmatprep.mubr.f32.mxu1 %v2683_v4 }
 0x1e7   :  { %1867 = vmatmul.mubr.f32.gmra.mrb[42].mxu1 %v2686_v7 }
 0x1e8   :  { %1869 = vmatprep.mubr.f32.mxu1 %v2689_v10 }
 0x1eb   :  { %1870 = vmatmul.mubr.f32.gmra.mrb[44].mxu1 %v2692_v13 }
 0x1ec   :  { %1872 = vmatprep.mubr.f32.mxu1 %v2695_v17 }
 0x1ef   :  { %1873 = vmatmul.mubr.f32.gmra.mrb[46].mxu1 %v2698_v20 }
 0x1f0   :  { %1875 = vmatprep.mubr.f32.mxu1 %v2701_v24 }
 0x1f3   :  { %1876 = vmatmul.mubr.f32.gmra.mrb[48].mxu1 %v2704_v28 }
 0x1f4   :  { %1878 = vmatprep.mubr.f32.mxu1 %v2711_v34 }
 0x1f7   :  { %1879 = vmatmul.mubr.f32.gmra.mrb[50].mxu1 %v2714_v37 }
 0x1f8   :  { %1881 = vmatprep.mubr.f32.mxu1 %v2721_v43 }
 0x1fb   :  { %1882 = vmatmul.mubr.f32.gmra.mrb[52].mxu1 %v2724_v47 }
 0x1fc   :  { %1884 = vmatprep.mubr.f32.mxu1 %v2731_v53 }
 0x1ff   :  { %1885 = vmatmul.mubr.f32.gmra.mrb[54].mxu1 %v2734_v56 }
 0x200   :  { %1887 = vmatprep.mubr.f32.mxu1 %v2741_v63 }
 0x203   :  { %1888 = vmatmul.mubr.f32.gmra.mrb[56].mxu1 %v2744_v5 }
 0x204   :  { %1890 = vmatprep.mubr.f32.mxu1 %v437_v12 }
 0x207   :  { %1891 = vmatmul.mubr.f32.gmra.mrb[58].mxu1 %v438_v18 }
 0x208   :  { %1893 = vmatprep.mubr.f32.mxu1 %v439_v26 }
 0x20b   :  { %1894 = vmatmul.mubr.f32.gmra.mrb[60].mxu1 %v440_v31 }
 0x20c   :  { %1896 = vmatprep.mubr.f32.mxu1 %v441_v40 }
 0x20f   :  { %1897 = vmatmul.mubr.f32.gmra.mrb[62].mxu1 %v442_v44 }
 0x210   :  { %1685 = vmatprep.mubr.f32.mxu1 %v2847_v42 }
 0x22a   :  { %v1773_v16 = vpop.f32.mrb[0].mxu1 }
 0x22b   :  { %v532_v21 = vpop.f32.mrb[1].mxu1  ;;  %v538_v58 = vadd.f32 %v1773_v16, %v2796_v55 }
 0x22c   :  { %v533_v60 = vadd.f32 %v2796_v55, %v532_v21 }
 0x22d   :  { %2151 = vtanh.f32 %v538_v58 }
 0x22e   :  { %2153 = vtanh.f32 %v533_v60  ;;  %v2477_v60 = vmov 0  }
 0x22f   :  { %2149 = vset.pattern.permute.xlu0 %v2477_v60  ;;  %2150 = vset.pattern.permute.xlu1 %v2477_v60 }
 0x232   :  { %v1776_v27 = vpop.f32.mrb[2].mxu1 }
 0x233   :  { %v542_v33 = vpop.f32.mrb[3].mxu1  ;;  %v548_v62 = vadd.f32 %v1776_v27, %v2796_v55 }
 0x234   :  { %v543_v63 = vadd.f32 %v2796_v55, %v542_v33 }
 0x235   :  { %2155 = vtanh.f32 %v548_v62 }
 0x236   :  { %2157 = vtanh.f32 %v543_v63 }
 0x237   :  { %v2820_v22 = vpop.eup %2151 }
 0x238   :  { %v2823_v25 = vpop.eup %2153 }
 0x23a   :  { %v1779_v39 = vpop.f32.mrb[4].mxu1 }
 0x23b   :  { %v552_v45 = vpop.f32.mrb[5].mxu1  ;;  %v558_v2 = vadd.f32 %v1779_v39, %v2796_v55 }
 0x23c   :  { %v553_v3 = vadd.f32 %v2796_v55, %v552_v45 }
 0x23d   :  { %2159 = vtanh.f32 %v558_v2 }
 0x23e   :  { %2161 = vtanh.f32 %v553_v3 }
 0x23f   :  { %v2828_v30 = vpop.eup %2155 }
 0x240   :  { %v2833_v35 = vpop.eup %2157 }
 0x242   :  { %v1782_v51 = vpop.f32.mrb[6].mxu1 }
 0x243   :  { %v562_v57 = vpop.f32.mrb[7].mxu1  ;;  %v568_v5 = vadd.f32 %v1782_v51, %v2796_v55 }
 0x244   :  { %v563_v6 = vadd.f32 %v2796_v55, %v562_v57 }
 0x245   :  { %2163 = vtanh.f32 %v568_v5 }
 0x246   :  { %2165 = vtanh.f32 %v563_v6 }
 0x247   :  { %v2841_v40 = vpop.eup %2159 }
 0x248   :  { %v2849_v44 = vpop.eup %2161 }
 0x24a   :  { %v1785_v61 = vpop.f32.mrb[8].mxu1 }
 0x24b   :  { %v572_v0 = vpop.f32.mrb[9].mxu1  ;;  %v578_v9 = vadd.f32 %v1785_v61, %v2796_v55 }
 0x24c   :  { %v573_v12 = vadd.f32 %v2796_v55, %v572_v0 }
 0x24d   :  { %2167 = vtanh.f32 %v578_v9 }
 0x24e   :  { %2169 = vtanh.f32 %v573_v12 }
 0x24f   :  { %v2853_v49 = vpop.eup %2163 }
 0x250   :  { %v2857_v33 = vpop.eup %2165 }
 0x252   :  { %v1788_v4 = vpop.f32.mrb[10].mxu1 }
 0x253   :  { %v582_v7 = vpop.f32.mrb[11].mxu1  ;;  %v588_v14 = vadd.f32 %v1788_v4, %v2796_v55 }
 0x254   :  { %v583_v15 = vadd.f32 %v2796_v55, %v582_v7 }
 0x255   :  { %2171 = vtanh.f32 %v588_v14 }
 0x256   :  { %2173 = vtanh.f32 %v583_v15 }
 0x257   :  { %v2860_v45 = vpop.eup %2167 }
 0x258   :  { %v2862_v57 = vpop.eup %2169 }
 0x25a   :  { %v1791_v10 = vpop.f32.mrb[12].mxu1 }
 0x25b   :  { %v592_v13 = vpop.f32.mrb[13].mxu1  ;;  %v598_v18 = vadd.f32 %v1791_v10, %v2796_v55 }
 0x25c   :  { %v593_v19 = vadd.f32 %v2796_v55, %v592_v13 }
 0x25d   :  { %2175 = vtanh.f32 %v598_v18 }
 0x25e   :  { %2177 = vtanh.f32 %v593_v19 }
 0x25f   :  { %v2864_v4 = vpop.eup %2171 }
 0x262   :  { %v1794_v17 = vpop.f32.mrb[14].mxu1 }
 0x263   :  { %v602_v20 = vpop.f32.mrb[15].mxu1  ;;  %v608_v23 = vadd.f32 %v1794_v17, %v2796_v55 }
 0x264   :  { %v603_v26 = vadd.f32 %v2796_v55, %v602_v20  ;;  %v2869_v20 = vpop.eup %2173 }
 0x265   :  { %2179 = vtanh.f32 %v608_v23 }
 0x266   :  { %2181 = vtanh.f32 %v603_v26 }
 0x26a   :  { %v1797_v24 = vpop.f32.mrb[16].mxu1 }
 0x26b   :  { %v612_v28 = vpop.f32.mrb[17].mxu1  ;;  %v618_v31 = vadd.f32 %v1797_v24, %v2796_v55 }
 0x26c   :  { %v613_v36 = vadd.f32 %v2796_v55, %v612_v28 }
 0x26d   :  { %2183 = vtanh.f32 %v618_v31 }
 0x26e   :  { %2185 = vtanh.f32 %v613_v36 }
 0x272   :  { %v1800_v34 = vpop.f32.mrb[18].mxu1 }
 0x273   :  { %v622_v37 = vpop.f32.mrb[19].mxu1  ;;  %v628_v41 = vadd.f32 %v1800_v34, %v2796_v55 }
 0x274   :  { %v623_v46 = vadd.f32 %v2796_v55, %v622_v37  ;;  %v1196_v37 = vld [vmem:[#allocation5] sm:$0x1] }
 0x275   :  { %2187 = vtanh.f32 %v628_v41  ;;  %1199 = vperm.xlu0 %2149, %v1196_v37  }
 0x276   :  { %2189 = vtanh.f32 %v623_v46 }
 0x27a   :  { %v1803_v43 = vpop.f32.mrb[20].mxu1 }
 0x27b   :  { %v2783_v47 = vpop.f32.mrb[21].mxu1  ;;  %v638_v16 = vadd.f32 %v1803_v43, %v2796_v55  ;;  %v2874_v43 = vpop.eup %2175 }
 0x27c   :  { %v633_v7 = vadd.f32 %v2796_v55, %v2783_v47  ;;  %v2876_v47 = vpop.eup %2177 }
 0x27d   :  { %2191 = vtanh.f32 %v638_v16  ;;  %v2878_v2 = vpop.eup %2179 }
 0x27e   :  { %v2883_v9 = vpop.eup %2181 }
 0x27f   :  { %v2888_v18 = vpop.eup %2183 }
 0x280   :  { %v2890_v23 = vpop.eup %2185 }
 0x281   :  { %v2892_v31 = vpop.eup %2187 }
 0x282   :  { %v2785_v50 = vpop.f32.mrb[22].mxu1 }
 0x283   :  { %v2787_v52 = vpop.f32.mrb[23].mxu1  ;;  %v648_v24 = vadd.f32 %v2785_v50, %v2796_v55 }
 0x284   :  { %v643_v50 = vadd.f32 %v2796_v55, %v2787_v52 }
 0x28a   :  { %v2789_v53 = vpop.f32.mrb[24].mxu1 }
 0x28b   :  { %v2791_v54 = vpop.f32.mrb[25].mxu1  ;;  %v658_v12 = vadd.f32 %v2789_v53, %v2796_v55 }
 0x28c   :  { %v653_v36 = vadd.f32 %v2796_v55, %v2791_v54 }
 0x292   :  { %v2798_v56 = vpop.f32.mrb[26].mxu1 }
 0x293   :  { %v2801_v59 = vpop.f32.mrb[27].mxu1  ;;  %v668_v16 = vadd.f32 %v2798_v56, %v2796_v55 }
 0x29a   :  { %v2810_v8 = vpop.f32.mrb[28].mxu1 }
 0x29b   :  { %v2813_v11 = vpop.f32.mrb[29].mxu1 }
 0x2a2   :  { %v2826_v29 = vpop.f32.mrb[30].mxu1 }
 0x2a3   :  { %v2831_v32 = vpop.f32.mrb[31].mxu1 }
 0x2a6   :  { %v1853_v48 = vpop.f32.mrb[32].mxu1 }
 0x2a7   :  { %v818_v21 = vadd.f32 %v1853_v48, %v2839_v38  ;;  %v812_v27 = vpop.f32.mrb[33].mxu1  ;;  %v2897_v48 = vpop.eup %2189 }
 0x2a8   :  { %v813_v39 = vadd.f32 %v2839_v38, %v812_v27 }
 0x2a9   :  { %v972_v51 = vsub.f32 0.0, %v818_v21 }
 0x2aa   :  { %v971_v61 = vsub.f32 0.0, %v813_v39  ;;  %v1856_v0 = vpop.f32.mrb[34].mxu1  ;;  %v2902_v39 = vpop.eup %2191 }
 0x2ab   :  { %v1005_v10 = vmul.f32 1.442695, %v972_v51  ;;  %v828_v13 = vadd.f32 %v1856_v0, %v2839_v38  ;;  %v822_v17 = vpop.f32.mrb[35].mxu1 }
 0x2ac   :  { %v1003_v28 = vmul.f32 1.442695, %v971_v61  ;;  %v823_v34 = vadd.f32 %v2839_v38, %v822_v17 }
 0x2ad   :  { %2193 = vpow2.f32 %v1005_v10  ;;  %v974_v58 = vsub.f32 0.0, %v828_v13 }
 0x2ae   :  { %2195 = vpow2.f32 %v1003_v28  ;;  %v973_v62 = vsub.f32 0.0, %v823_v34  ;;  %v1859_v63 = vpop.f32.mrb[36].mxu1 }
 0x2af   :  { %2197 = vtanh.f32 %v633_v7  ;;  %v1009_v3 = vmul.f32 1.442695, %v974_v58  ;;  %v838_v5 = vadd.f32 %v1859_v63, %v2839_v38  ;;  %v832_v6 = vpop.f32.mrb[37].mxu1 }
 0x2b0   :  { %2199 = vtanh.f32 %v648_v24  ;;  %v1007_v14 = vmul.f32 1.442695, %v973_v62  ;;  %v833_v15 = vadd.f32 %v2839_v38, %v832_v6 }
 0x2b1   :  { %2201 = vpow2.f32 %v1009_v3  ;;  %v976_v19 = vsub.f32 0.0, %v838_v5 }
 0x2b2   :  { %2203 = vpow2.f32 %v1007_v14  ;;  %v975_v52 = vsub.f32 0.0, %v833_v15  ;;  %v1862_v26 = vpop.f32.mrb[38].mxu1 }
 0x2b3   :  { %2205 = vtanh.f32 %v643_v50  ;;  %v1013_v41 = vmul.f32 1.442695, %v976_v19  ;;  %v848_v53 = vadd.f32 %v1862_v26, %v2839_v38  ;;  %v842_v46 = vpop.f32.mrb[39].mxu1 }
 0x2b4   :  { %2207 = vtanh.f32 %v658_v12  ;;  %v1011_v21 = vmul.f32 1.442695, %v975_v52  ;;  %v843_v27 = vadd.f32 %v2839_v38, %v842_v46 }
 0x2b5   :  { %2209 = vpow2.f32 %v1013_v41  ;;  %v978_v51 = vsub.f32 0.0, %v848_v53 }
 0x2b6   :  { %2211 = vpow2.f32 %v1011_v21  ;;  %v977_v61 = vsub.f32 0.0, %v843_v27  ;;  %v1865_v54 = vpop.f32.mrb[40].mxu1 }
 0x2b7   :  { %v2194_v0 = vpop.eup %2193  ;;  %2213 = vtanh.f32 %v653_v36  ;;  %v1017_v7 = vmul.f32 1.442695, %v978_v51  ;;  %v858_v10 = vadd.f32 %v1865_v54, %v2839_v38  ;;  %v852_v13 = vpop.f32.mrb[41].mxu1 }
 0x2b8   :  { %v2196_v17 = vpop.eup %2195  ;;  %2215 = vtanh.f32 %v668_v16  ;;  %v1068_v24 = vadd.f32 1.0, %v2194_v0  ;;  %v1015_v56 = vmul.f32 1.442695, %v977_v61  ;;  %v853_v28 = vadd.f32 %v2839_v38, %v852_v13 }
 0x2b9   :  { %v2906_v34 = vpop.eup %2197  ;;  %v1067_v37 = vadd.f32 1.0, %v2196_v17  ;;  %2217 = vpow2.f32 %v1017_v7  ;;  %v980_v58 = vsub.f32 0.0, %v858_v10 }
 0x2ba   :  { %v2908_v60 = vpop.eup %2199  ;;  %2219 = vrcp.f32 %v1068_v24  ;;  %v979_v62 = vsub.f32 0.0, %v853_v28  ;;  %v1868_v63 = vpop.f32.mrb[42].mxu1 }
 0x2bb   :  { %v2202_v50 = vpop.eup %2201  ;;  %2221 = vrcp.f32 %v1067_v37  ;;  %v1021_v3 = vmul.f32 1.442695, %v980_v58  ;;  %v868_v5 = vadd.f32 %v1868_v63, %v2839_v38  ;;  %v862_v6 = vpop.f32.mrb[43].mxu1 }
 0x2bc   :  { %v2204_v12 = vpop.eup %2203  ;;  %v1070_v14 = vadd.f32 1.0, %v2202_v50  ;;  %2223 = vpow2.f32 %v1015_v56  ;;  %v1019_v15 = vmul.f32 1.442695, %v979_v62  ;;  %v863_v19 = vadd.f32 %v2839_v38, %v862_v6 }
 0x2bd   :  { %v2912_v52 = vpop.eup %2205  ;;  %v1069_v26 = vadd.f32 1.0, %v2204_v12  ;;  %2225 = vpow2.f32 %v1021_v3  ;;  %v982_v36 = vsub.f32 0.0, %v868_v5 }
 0x2be   :  { %v2914_v41 = vpop.eup %2207  ;;  %2227 = vrcp.f32 %v1070_v14  ;;  %v981_v53 = vsub.f32 0.0, %v863_v19  ;;  %v1871_v46 = vpop.f32.mrb[44].mxu1 }
 0x2bf   :  { %v2210_v16 = vpop.eup %2209  ;;  %2229 = vrcp.f32 %v1069_v26  ;;  %v1025_v21 = vmul.f32 1.442695, %v982_v36  ;;  %v878_v27 = vadd.f32 %v1871_v46, %v2839_v38  ;;  %v872_v51 = vpop.f32.mrb[45].mxu1 }
 0x2c0   :  { %v2212_v61 = vpop.eup %2211  ;;  %v1072_v54 = vadd.f32 1.0, %v2210_v16  ;;  %2231 = vpow2.f32 %v1019_v15  ;;  %v1023_v0 = vmul.f32 1.442695, %v981_v53  ;;  %v873_v7 = vadd.f32 %v2839_v38, %v872_v51 }
 0x2c1   :  { %v2918_v10 = vpop.eup %2213  ;;  %v1071_v13 = vadd.f32 1.0, %v2212_v61  ;;  %2233 = vpow2.f32 %v1025_v21  ;;  %v984_v17 = vsub.f32 0.0, %v878_v27 }
 0x2c2   :  { %v2920_v24 = vpop.eup %2215  ;;  %2235 = vrcp.f32 %v1072_v54  ;;  %v983_v56 = vsub.f32 0.0, %v873_v7  ;;  %v1874_v28 = vpop.f32.mrb[46].mxu1 }
 0x2c3   :  { %v2218_v37 = vpop.eup %2217  ;;  %2237 = vrcp.f32 %v1071_v13  ;;  %v1029_v58 = vmul.f32 1.442695, %v984_v17  ;;  %v888_v62 = vadd.f32 %v1874_v28, %v2839_v38  ;;  %v882_v63 = vpop.f32.mrb[47].mxu1 }
 0x2c4   :  { %v2220_v50 = vpop.eup %2219  ;;  %v1074_v3 = vadd.f32 1.0, %v2218_v37  ;;  %2239 = vpow2.f32 %v1023_v0  ;;  %v1027_v5 = vmul.f32 1.442695, %v983_v56  ;;  %v883_v6 = vadd.f32 %v2839_v38, %v882_v63 }
 0x2c5   :  { %v2222_v12 = vpop.eup %2221  ;;  %2241 = vpow2.f32 %v1029_v58  ;;  %v986_v14 = vsub.f32 0.0, %v888_v62  ;;  %v2925_v15 = vmul.f32 %v2220_v50, %v2820_v22 }
 0x2c6   :  { %v2224_v19 = vpop.eup %2223  ;;  %2243 = vrcp.f32 %v1074_v3  ;;  %v985_v26 = vsub.f32 0.0, %v883_v6  ;;  %v1877_v36 = vpop.f32.mrb[48].mxu1  ;;  %v2928_v53 = vmul.f32 %v2222_v12, %v2823_v25 }
 0x2c7   :  { %v2226_v46 = vpop.eup %2225  ;;  %v1073_v16 = vadd.f32 1.0, %v2224_v19  ;;  %2245 = vpow2.f32 %v1027_v5  ;;  %v1033_v21 = vmul.f32 1.442695, %v986_v14  ;;  %v898_v27 = vadd.f32 %v1877_v36, %v2839_v38  ;;  %v892_v51 = vpop.f32.mrb[49].mxu1 }
 0x2c8   :  { %v2228_v61 = vpop.eup %2227  ;;  %v1076_v54 = vadd.f32 1.0, %v2226_v46  ;;  %v1031_v0 = vmul.f32 1.442695, %v985_v26  ;;  %v893_v22 = vadd.f32 %v2839_v38, %v892_v51  ;;  %v2048_v7 = vpack.c.bf16 %v2925_v15, %v2928_v53 }
 0x2c9   :  { %v2230_v13 = vpop.eup %2229  ;;  %2247 = vrcp.f32 %v1073_v16  ;;  %v988_v17 = vsub.f32 0.0, %v898_v27  ;;  %v2935_v25 = vmul.f32 %v2228_v61, %v2828_v30  ;;  %v688_v15 = vadd.f32 %v2826_v29, %v2796_v55 }
 0x2ca   :  { %v2232_v56 = vpop.eup %2231  ;;  %2249 = vrcp.f32 %v1076_v54  ;;  %v987_v28 = vsub.f32 0.0, %v893_v22  ;;  %v1880_v37 = vpop.f32.mrb[50].mxu1  ;;  %v2938_v58 = vmul.f32 %v2230_v13, %v2833_v35 }
 0x2cb   :  { %v2234_v62 = vpop.eup %2233  ;;  %v1075_v63 = vadd.f32 1.0, %v2232_v56  ;;  %2251 = vpow2.f32 %v1033_v21  ;;  %v1037_v50 = vmul.f32 1.442695, %v988_v17  ;;  %v908_v3 = vadd.f32 %v1880_v37, %v2839_v38  ;;  %v902_v5 = vpop.f32.mrb[51].mxu1 }
 0x2cc   :  { %v2236_v6 = vpop.eup %2235  ;;  %v1078_v12 = vadd.f32 1.0, %v2234_v62  ;;  %2253 = vpow2.f32 %v1031_v0  ;;  %v1035_v14 = vmul.f32 1.442695, %v987_v28  ;;  %v903_v30 = vadd.f32 %v2839_v38, %v902_v5 }
 0x2cd   :  { %v2238_v19 = vpop.eup %2237  ;;  %2255 = vrcp.f32 %v1075_v63  ;;  %v990_v26 = vsub.f32 0.0, %v908_v3  ;;  %v2052_v35 = vpack.c.bf16 %v2935_v25, %v2938_v58  ;;  %v2945_v36 = vmul.f32 %v2236_v6, %v2841_v40 }
 0x2ce   :  { %v2240_v46 = vpop.eup %2239  ;;  %2257 = vrcp.f32 %v1078_v12  ;;  %v989_v16 = vsub.f32 0.0, %v903_v30  ;;  %v1883_v21 = vpop.f32.mrb[52].mxu1  ;;  %v2948_v27 = vmul.f32 %v2238_v19, %v2849_v44 }
 0x2cf   :  { %v2242_v51 = vpop.eup %2241  ;;  %v1077_v61 = vadd.f32 1.0, %v2240_v46  ;;  %2259 = vpow2.f32 %v1037_v50  ;;  %v1041_v54 = vmul.f32 1.442695, %v990_v26  ;;  %v918_v0 = vadd.f32 %v1883_v21, %v2839_v38  ;;  %v912_v22 = vpop.f32.mrb[53].mxu1 }
 0x2d0   :  { %v2244_v13 = vpop.eup %2243  ;;  %v1080_v17 = vadd.f32 1.0, %v2242_v51  ;;  %2261 = vpow2.f32 %v1035_v14  ;;  %v1039_v56 = vmul.f32 1.442695, %v989_v16  ;;  %v913_v40 = vadd.f32 %v2839_v38, %v912_v22 }
 0x2d1   :  { %v2246_v28 = vpop.eup %2245  ;;  %2263 = vrcp.f32 %v1077_v61  ;;  %v992_v37 = vsub.f32 0.0, %v918_v0  ;;  %v2056_v44 = vpack.c.bf16 %v2945_v36, %v2948_v27  ;;  %v2955_v62 = vmul.f32 %v2244_v13, %v2853_v49 }
 0x2d2   :  { %2265 = vrcp.f32 %v1080_v17  ;;  %v1079_v63 = vadd.f32 1.0, %v2246_v28  ;;  %v991_v50 = vsub.f32 0.0, %v913_v40  ;;  %v1886_v3 = vpop.f32.mrb[54].mxu1  ;;  %v2478_v27 = vmov -inf  }
 0x2d3   :  { %v2248_v5 = vpop.eup %2247  ;;  %2267 = vpow2.f32 %v1041_v54  ;;  %v1045_v6 = vmul.f32 1.442695, %v992_v37  ;;  %v928_v12 = vadd.f32 %v1886_v3, %v2839_v38  ;;  %v922_v14 = vpop.f32.mrb[55].mxu1  ;;  %87 = vst.msk [vmem:[#allocation2] sm:$0x1] %vm86_vm0, %v2478_v27 }
 0x2d4   :  { %v2250_v30 = vpop.eup %2249  ;;  %2269 = vrcp.f32 %v1079_v63  ;;  %v1043_v19 = vmul.f32 1.442695, %v991_v50  ;;  %v923_v26 = vadd.f32 %v2839_v38, %v922_v14  ;;  %v2960_v46 = vmul.f32 %v2248_v5, %v2857_v33 }
 0x2d5   :  { %v2252_v49 = vpop.eup %2251  ;;  %2271 = vpow2.f32 %v1039_v56  ;;  %v994_v16 = vsub.f32 0.0, %v928_v12  ;;  %v2963_v21 = vmul.f32 %v2250_v30, %v2860_v45 }
 0x2d6   :  { %v2254_v51 = vpop.eup %2253  ;;  %v1082_v61 = vadd.f32 1.0, %v2252_v49  ;;  %2273 = vpow2.f32 %v1045_v6  ;;  %v993_v54 = vsub.f32 0.0, %v923_v26  ;;  %v1889_v0 = vpop.f32.mrb[56].mxu1  ;;  %v2060_v22 = vpack.c.bf16 %v2955_v62, %v2960_v46 }
 0x2d7   :  { %v2256_v13 = vpop.eup %2255  ;;  %v1081_v17 = vadd.f32 1.0, %v2254_v51  ;;  %2275 = vpow2.f32 %v1043_v19  ;;  %v1049_v40 = vmul.f32 1.442695, %v994_v16  ;;  %v938_v33 = vadd.f32 %v1889_v0, %v2839_v38  ;;  %v932_v28 = vpop.f32.mrb[57].mxu1 }
 0x2d8   :  { %v2258_v56 = vpop.eup %2257  ;;  %2277 = vrcp.f32 %v1082_v61  ;;  %v1047_v37 = vmul.f32 1.442695, %v993_v54  ;;  %v933_v45 = vadd.f32 %v2839_v38, %v932_v28  ;;  %v2970_v63 = vmul.f32 %v2256_v13, %v2862_v57 }
 0x2d9   :  { %v2260_v50 = vpop.eup %2259  ;;  %2279 = vrcp.f32 %v1081_v17  ;;  %v996_v3 = vsub.f32 0.0, %v938_v33  ;;  %v2973_v5 = vmul.f32 %v2258_v56, %v2864_v4 }
 0x2da   :  { %v2262_v6 = vpop.eup %2261  ;;  %v1084_v12 = vadd.f32 1.0, %v2260_v50  ;;  %2281 = vpow2.f32 %v1049_v40  ;;  %v995_v14 = vsub.f32 0.0, %v933_v45  ;;  %v1892_v30 = vpop.f32.mrb[58].mxu1  ;;  %v2064_v19 = vpack.c.bf16 %v2963_v21, %v2970_v63 }
 0x2db   :  { %v2264_v26 = vpop.eup %2263  ;;  %v1083_v49 = vadd.f32 1.0, %v2262_v6  ;;  %2283 = vpow2.f32 %v1047_v37  ;;  %v1053_v16 = vmul.f32 1.442695, %v996_v3  ;;  %v948_v57 = vadd.f32 %v1892_v30, %v2839_v38  ;;  %v942_v51 = vpop.f32.mrb[59].mxu1 }
 0x2dc   :  { %v2266_v61 = vpop.eup %2265  ;;  %2285 = vrcp.f32 %v1084_v12  ;;  %v1051_v54 = vmul.f32 1.442695, %v995_v14  ;;  %v943_v4 = vadd.f32 %v2839_v38, %v942_v51  ;;  %v2980_v0 = vmul.f32 %v2264_v26, %v2869_v20 }
 0x2dd   :  { %v2268_v13 = vpop.eup %2267  ;;  %2287 = vrcp.f32 %v1083_v49  ;;  %v998_v17 = vsub.f32 0.0, %v948_v57  ;;  %v2983_v40 = vmul.f32 %v2266_v61, %v2874_v43 }
 0x2de   :  { %v2270_v33 = vpop.eup %2269  ;;  %v1086_v28 = vadd.f32 1.0, %v2268_v13  ;;  %2289 = vpow2.f32 %v1053_v16  ;;  %v997_v56 = vsub.f32 0.0, %v943_v4  ;;  %v1895_v37 = vpop.f32.mrb[60].mxu1  ;;  %v2068_v45 = vpack.c.bf16 %v2973_v5, %v2980_v0 }
 0x2df   :  { %v2272_v50 = vpop.eup %2271  ;;  %2291 = vpow2.f32 %v1051_v54  ;;  %v1057_v3 = vmul.f32 1.442695, %v998_v17  ;;  %v958_v20 = vadd.f32 %v1895_v37, %v2839_v38  ;;  %v952_v6 = vpop.f32.mrb[61].mxu1  ;;  %v2989_v12 = vmul.f32 %v2270_v33, %v2876_v47 }
 0x2e0   :  { %v2274_v14 = vpop.eup %2273  ;;  %2293 = vrcp.f32 %v1086_v28  ;;  %v1085_v43 = vadd.f32 1.0, %v2272_v50  ;;  %v1055_v30 = vmul.f32 1.442695, %v997_v56  ;;  %v953_v26 = vadd.f32 %v2839_v38, %v952_v6 }
 0x2e1   :  { %v2276_v49 = vpop.eup %2275  ;;  %v1088_v16 = vadd.f32 1.0, %v2274_v14  ;;  %2295 = vpow2.f32 %v1057_v3  ;;  %v1000_v57 = vsub.f32 0.0, %v958_v20  ;;  %v2072_v51 = vpack.c.bf16 %v2983_v40, %v2989_v12 }
 0x2e2   :  { %v2278_v61 = vpop.eup %2277  ;;  %2297 = vrcp.f32 %v1085_v43  ;;  %v1087_v54 = vadd.f32 1.0, %v2276_v49  ;;  %v999_v4 = vsub.f32 0.0, %v953_v26  ;;  %v1898_v13 = vpop.f32.mrb[62].mxu1 }
 0x2e3   :  { %v2280_v47 = vpop.eup %2279  ;;  %2299 = vrcp.f32 %v1088_v16  ;;  %v1061_v17 = vmul.f32 1.442695, %v1000_v57  ;;  %v968_v33 = vadd.f32 %v1898_v13, %v2839_v38  ;;  %v962_v28 = vpop.f32.mrb[63].mxu1  ;;  %v2996_v56 = vmul.f32 %v2278_v61, %v2878_v2 }
 0x2e4   :  { %v2282_v37 = vpop.eup %2281  ;;  %2301 = vrcp.f32 %v1087_v54  ;;  %v963_v50 = vadd.f32 %v2839_v38, %v962_v28  ;;  %v3000_v3 = vmul.f32 %v2280_v47, %v2883_v9  ;;  %v1059_v14 = vmul.f32 1.442695, %v999_v4 }
 0x2e5   :  { %v2284_v20 = vpop.eup %2283  ;;  %v1090_v6 = vadd.f32 1.0, %v2282_v37  ;;  %2303 = vpow2.f32 %v1055_v30  ;;  %v1002_v43 = vsub.f32 0.0, %v968_v33 }
 0x2e6   :  { %v2286_v26 = vpop.eup %2285  ;;  %v1089_v49 = vadd.f32 1.0, %v2284_v20  ;;  %2305 = vpow2.f32 %v1061_v17  ;;  %v1001_v16 = vsub.f32 0.0, %v963_v50  ;;  %v2076_v2 = vpack.c.bf16 %v2996_v56, %v3000_v3 }
 0x2e7   :  { %v2288_v57 = vpop.eup %2287  ;;  %2307 = vrcp.f32 %v1090_v6  ;;  %v1065_v61 = vmul.f32 1.442695, %v1002_v43  ;;  %v1180_v38 = vmul.f32 %v2286_v26, %v2888_v18  ;;  %v663_v18 = vadd.f32 %v2796_v55, %v2801_v59 }
 0x2e8   :  { %v2290_v54 = vpop.eup %2289  ;;  %2309 = vrcp.f32 %v1089_v49  ;;  %v1179_v9 = vmul.f32 %v2288_v57, %v2890_v23  ;;  %v1063_v4 = vmul.f32 1.442695, %v1001_v16  ;;  %v678_v6 = vadd.f32 %v2810_v8, %v2796_v55 }
 0x2e9   :  { %v2292_v13 = vpop.eup %2291  ;;  %v1092_v30 = vadd.f32 1.0, %v2290_v54  ;;  %2311 = vpow2.f32 %v1059_v14  ;;  %v673_v8 = vadd.f32 %v2796_v55, %v2813_v11 }
 0x2ea   :  { %v2294_v47 = vpop.eup %2293  ;;  %v1091_v33 = vadd.f32 1.0, %v2292_v13  ;;  %2313 = vpow2.f32 %v1065_v61  ;;  %v2046_v17 = vpack.c.bf16 %v1180_v38, %v1179_v9  ;;  %v683_v13 = vadd.f32 %v2796_v55, %v2831_v32 }
 0x2eb   :  { %v2296_v28 = vpop.eup %2295  ;;  %2315 = vrcp.f32 %v1092_v30  ;;  %v1182_v37 = vmul.f32 %v2294_v47, %v2892_v31 }
 0x2ec   :  { %v2298_v50 = vpop.eup %2297  ;;  %2317 = vrcp.f32 %v1091_v33  ;;  %v1094_v20 = vadd.f32 1.0, %v2296_v28  ;;  %2047 = vmatprep.subr.bf16.mxu1 %v2046_v17 }
 0x2ed   :  { %v2300_v23 = vpop.eup %2299  ;;  %2319 = vpow2.f32 %v1063_v4  ;;  %2049 = vmatpush3.bf16.xpose.msra.mxu1 %v2048_v7  ;;  %v1181_v14 = vmul.f32 %v2298_v50, %v2897_v48 }
 0x2ee   :  { %v2302_v43 = vpop.eup %2301  ;;  %2321 = vrcp.f32 %v1094_v20  ;;  %v1184_v31 = vmul.f32 %v2300_v23, %v2902_v39 }
 0x2ef   :  { %v2304_v26 = vpop.eup %2303  ;;  %v2050_v59 = vpack.c.bf16 %v1182_v37, %v1181_v14  ;;  %v1183_v49 = vmul.f32 %v2302_v43, %v2906_v34  ;;  %2323 = vtanh.f32 %v663_v18 }
 0x2f0   :  { %v2306_v16 = vpop.eup %2305  ;;  %v1093_v57 = vadd.f32 1.0, %v2304_v26  ;;  %2325 = vtanh.f32 %v678_v6 }
 0x2f1   :  { %v2308_v61 = vpop.eup %2307  ;;  %v1096_v48 = vadd.f32 1.0, %v2306_v16  ;;  %2051 = vmatprep.subr.bf16.mxu1 %v2050_v59  ;;  %v2054_v53 = vpack.c.bf16 %v1184_v31, %v1183_v49  ;;  %v2480_v16 = vmov 0.0  }
 0x2f2   :  { %v2310_v7 = vpop.eup %2309  ;;  %2327 = vrcp.f32 %v1093_v57  ;;  %v1186_v39 = vmul.f32 %v2308_v61, %v2908_v60  ;;  %89 = vst [vmem:[#allocation4] sm:$0x1] %v2480_v16  ;;  %88 = vst.msk [vmem:[#allocation3] sm:$0x1] %vm86_vm0, %v2480_v16 }
 0x2f3   :  { %v2312_v38 = vpop.eup %2311  ;;  %2329 = vrcp.f32 %v1096_v48  ;;  %v1185_v34 = vmul.f32 %v2310_v7, %v2912_v52 }
 0x2f4   :  { %v2314_v54 = vpop.eup %2313  ;;  %2331 = vtanh.f32 %v673_v8  ;;  %v1095_v11 = vadd.f32 1.0, %v2312_v38  ;;  %v1200_v21 = vpop.permute.xlu0 %1199  ;;  %v1300_v8 = vld [vmem:[#allocation2] sm:$0x1] }
 0x2f5   :  { %v2316_v9 = vpop.eup %2315  ;;  %2333 = vtanh.f32 %v688_v15  ;;  %v1098_v29 = vadd.f32 1.0, %v2314_v54  ;;  %2053 = vmatpush3.bf16.xpose.msra.mxu1 %v2052_v35  ;;  %v2058_v30 = vpack.c.bf16 %v1186_v39, %v1185_v34 }
 0x2f6   :  { %v2318_v4 = vpop.eup %2317  ;;  %2335 = vrcp.f32 %v1095_v11  ;;  %2055 = vmatprep.subr.bf16.mxu1 %v2054_v53  ;;  %v1188_v60 = vmul.f32 %v2316_v9, %v2914_v41 }
 0x2f7   :  { %v2320_v52 = vpop.eup %2319  ;;  %2337 = vrcp.f32 %v1098_v29  ;;  %v1187_v47 = vmul.f32 %v2318_v4, %v2918_v10 }
 0x2f8   :  { %v2322_v33 = vpop.eup %2321  ;;  %v1097_v17 = vadd.f32 1.0, %v2320_v52  ;;  %2339 = vtanh.f32 %v683_v13  ;;  %v1437_v52 = vld [vmem:[%s3158_s8 + $0x8] sm:$0xff] }
 0x2f9   :  { %v2062_v28 = vpack.c.bf16 %v1188_v60, %v1187_v47  ;;  %v1190_v55 = vmul.f32 %v2322_v33, %v2920_v24  ;;  %v2324_v32 = vpop.eup %2323  ;;  %v1436_v60 = vld [vmem:[%s3158_s8] sm:$0xff]  ;;  %v1438_v47 = vld [vmem:[%s3158_s8 + $0x10] sm:$0xff] }
 0x2fa   :  { %2341 = vrcp.f32 %v1097_v17  ;;  %v2326_v25 = vpop.eup %2325  ;;  %v2111_v33 = vpack.c.bf16 %v1437_v52, %v1436_v60  ;;  %v1439_v17 = vld [vmem:[%s3158_s8 + $0x18] sm:$0xff] }
 0x2fc   :  { %v2328_v58 = vpop.eup %2327 }
 0x2fd   :  { %v2330_v35 = vpop.eup %2329  ;;  %2057 = vmatpush3.bf16.xpose.msra.mxu1 %v2056_v44  ;;  %v1189_v41 = vmul.f32 %v2328_v58, %v2324_v32  ;;  %v1202_v44 = vlaneseq  ;;  %v1441_v32 = vld [vmem:[%s3158_s8 + $0x28] sm:$0xff]  ;;  %v1442_v58 = vld [vmem:[%s3158_s8 + $0x30] sm:$0xff] }
 0x2fe   :  { %v2332_v37 = vpop.eup %2331  ;;  %2059 = vmatprep.subr.bf16.mxu1 %v2058_v30  ;;  %v1192_v50 = vmul.f32 %v2330_v35, %v2326_v25  ;;  %v1443_v35 = vld [vmem:[%s3158_s8 + $0x38] sm:$0xff] }
 0x2ff   :  { %v2334_v10 = vpop.eup %2333  ;;  %v2066_v18 = vpack.c.bf16 %v1190_v55, %v1189_v41  ;;  %v1203_v62 = vshrl.u32 %v1202_v44, 7  ;;  %vm1297_vm2 = vcmp.lt.s32.totalorder %v1202_v44, 256  ;;  %v1440_v55 = vld [vmem:[%s3158_s8 + $0x20] sm:$0xff]  ;;  %v2120_v41 = vpack.c.bf16 %v1443_v35, %v1442_v58  ;;  %v1450_v44 = vld [vmem:[%s3158_s8 + $0x70] sm:$0xff] }
 0x300   :  { %v2336_v20 = vpop.eup %2335  ;;  %v2117_v25 = vpack.c.bf16 %v1441_v32, %v1440_v55 }
 0x301   :  { %v2338_v23 = vpop.eup %2337  ;;  %v1191_v6 = vmul.f32 %v2336_v20, %v2332_v37  ;;  %v3052_v46 = vsub.s32 0, %v1203_v62  ;;  %v1326_v37 = vld [vmem:[#allocation3] sm:$0x1] }
 0x302   :  { %v1194_v14 = vmul.f32 %v2338_v23, %v2334_v10  ;;  %v2340_v24 = vpop.eup %2339  ;;  %v1444_v20 = vld [vmem:[%s3158_s8 + $0x40] sm:$0xff]  ;;  %v1445_v23 = vld [vmem:[%s3158_s8 + $0x48] sm:$0xff] }
 0x303   :  { %v2070_v43 = vpack.c.bf16 %v1192_v50, %v1191_v6  ;;  %v1205_v5 = vrot.slane %v1200_v21, %v3052_v46  ;;  %v2123_v6 = vpack.c.bf16 %v1445_v23, %v1444_v20 }
 0x304   :  { %v2342_v31 = vpop.eup %2341 }
 0x305   :  { %2061 = vmatpush3.bf16.xpose.msra.mxu1 %v2060_v22  ;;  %v1193_v26 = vmul.f32 %v2342_v31, %v2340_v24  ;;  %v2479_v22 = vmov 1966171168   ;;  %v1446_v24 = vld [vmem:[%s3158_s8 + $0x50] sm:$0xff] }
 0x306   :  { %2063 = vmatprep.subr.bf16.mxu1 %v2062_v28  ;;  %v1281_v63 = vunpack.c.l.s4 %v2479_v22  ;;  %v2114_v28 = vpack.c.bf16 %v1439_v17, %v1438_v47 }
 0x307   :  { %v2074_v36 = vpack.c.bf16 %v1194_v14, %v1193_v26  ;;  %v1448_v26 = vld [vmem:[%s3158_s8 + $0x60] sm:$0xff] }
 0x30d   :  { %2065 = vmatpush3.bf16.xpose.msra.mxu1 %v2064_v19  ;;  %v1282_v19 = vunpack.c.0.s8 %v1281_v63 }
 0x30e   :  { %2067 = vmatprep.subr.bf16.mxu1 %v2066_v18 }
 0x315   :  { %2069 = vmatpush3.bf16.xpose.msra.mxu1 %v2068_v45 }
 0x316   :  { %2071 = vmatprep.subr.bf16.mxu1 %v2070_v43  ;;  %v1447_v43 = vld [vmem:[%s3158_s8 + $0x58] sm:$0xff] }
 0x317   :  { %v2126_v31 = vpack.c.bf16 %v1447_v43, %v1446_v24 }
 0x31d   :  { %2073 = vmatpush3.bf16.xpose.msra.mxu1 %v2072_v51 }
 0x31e   :  { %2075 = vmatprep.subr.bf16.mxu1 %v2074_v36  ;;  %v1449_v36 = vld [vmem:[%s3158_s8 + $0x68] sm:$0xff] }
 0x31f   :  { %v2129_v27 = vpack.c.bf16 %v1449_v36, %v1448_v26 }
 0x325   :  { %2077 = vmatpush3.bf16.xpose.msra.mxu1 %v2076_v2 }
 0x326   :  { %2110 = vmatprep.subr.bf16.mxu1 %v2476_v1 }
 0x32c   :  { %1686 = vmatmul.mubr.f32.vlgmr.msra.gmra.mrb[64].mxu1 %v2847_v42  ;;  %v1285_v42 = vsub.s32 %v1282_v19, %v1203_v62  ;;  %v1451_v62 = vld [vmem:[%s3158_s8 + $0x78] sm:$0xff]  ;;  %s2482_s8 = smov [#allocation13]  }
 0x32d   :  { %2112 = vmatpush3.bf16.msra.mxu1 %v2111_v33  ;;  %1931 = vmatprep.mubr.msk.f32.mxu1 %vm2481_vm3, %v2480_v16  ;;  %v2132_v21 = vpack.c.bf16 %v1451_v62, %v1450_v44  ;;  %s1541_s13 = sshll.u32 %s2482_s8, 4  ;;  %s1542_s13 = int_to_ptr.vmem [resolvable:$true] %s1541_s13 }
 0x32e   :  { %2113 = vmatprep.subr.bf16.mxu1 %v2476_v1  ;;  %s2417_s15 = scalar_lea.vmem %s1542_s13, 32  ;;  %p2422_p11 = scmp.lt.s32.totalorder %s1542_s13, %s1542_s13 }
 0x32f   :  { %p2418_p10 = scmp.ne.s32.totalorder %s1542_s13, %s2417_s15  ;;  %p2423_p12 = scmp.lt.s32.totalorder %s2417_s15, %s2417_s15 }
 0x331   :  { %2115 = vmatpush3.bf16.msra.mxu1 %v2114_v28  ;;  %p2424_p13 = por %p2423_p12, %p2422_p11 }
 0x332   :  { %2116 = vmatprep.subr.bf16.mxu1 %v2476_v1 }
 0x333   :  { %p2425_p0 = pnand %p2424_p13, %p2418_p10 }
 0x335   :  { %2118 = vmatpush3.bf16.msra.mxu1 %v2117_v25 }
 0x336   :  { %2119 = vmatprep.subr.bf16.mxu1 %v2476_v1 }
 0x339   :  { %2121 = vmatpush3.bf16.msra.mxu1 %v2120_v41 }
 0x33a   :  { %2122 = vmatprep.subr.bf16.mxu1 %v2476_v1 }
 0x33d   :  { %2124 = vmatpush3.bf16.msra.mxu1 %v2123_v6 }
 0x33e   :  { %2125 = vmatprep.subr.bf16.mxu1 %v2476_v1 }
 0x341   :  { %2127 = vmatpush3.bf16.msra.mxu1 %v2126_v31 }
 0x342   :  { %2128 = vmatprep.subr.bf16.mxu1 %v2476_v1 }
 0x345   :  { %2130 = vmatpush3.bf16.msra.mxu1 %v2129_v27 }
 0x346   :  { %2131 = vmatprep.subr.bf16.mxu1 %v2476_v1 }
 0x349   :  { %2133 = vmatpush3.bf16.msra.mxu1 %v2132_v21 }
 0x3ff   :  { %v1272_v0 = vpop.f32.mrb[64].mxu1 }
 0x400   :  { %v1273_v40 = vadd.f32 %v1272_v0, %v1205_v5  ;;  %v1274_v45 = vpop.f32.mrb[65].mxu1 }
 0x401   :  { %v1275_v12 = vadd.f32 %v1274_v45, %v1205_v5  ;;  %v1336_v5 = vld [vmem:[#allocation4] sm:$0x1] }
 0x402   :  { %v1302_v51 = vsel %vm1301_vm1, %v1273_v40, -inf }
 0x403   :  { %v1279_v56 = vcombine.low %v1273_v40, %v1275_v12  ;;  %v1303_v3 = vsel %vm1301_vm1, %v1275_v12, -inf }
 0x404   :  { %v1304_v2 = vmax.f32 %v1302_v51, %v1303_v3 }
 0x405   :  { %v1286_v59 = vrot.slane %v1279_v56, %v1285_v42 }
 0x406   :  { %1305 = vmax.xlane.f32.xlu0 %v1304_v2 }
 0x407   :  { %v1293_v49 = vrot.slane %v1286_v59, %v1285_v42 }
 0x409   :  { %1299 = vst.msk [vmem:[#allocation13] sm:$0x3] %vm1297_vm2, %v1293_v49 }
 0x493   :  { %v1306_v57 = vpop.xlane.xlu0 %1305 }
 0x494   :  { %v1307_v61 = vmax.f32 %v1300_v8, %v1306_v57 }
 0x496   :  { %v1308_v15 = vsub.f32 %v1300_v8, %v1307_v61  ;;  %1419 = vst.msk [vmem:[#allocation2] sm:$0x1] %vm86_vm0, %v1307_v61  ;;  %1313 = vperm.xlu1 %2150, %v1307_v61  }
 0x498   :  { %v1309_v48 = vmul.f32 1.442695, %v1308_v15 }
 0x49a   :  { %2343 = vpow2.f32 %v1309_v48 }
 0x4a4   :  { %v2344_v53 = vpop.eup %2343 }
 0x4a5   :  { %1339 = vperm.xlu0 %2149, %v2344_v53   ;;  %v1327_v50 = vmul.f32 %v2344_v53, %v1326_v37 }
 0x515   :  { %v1314_v7 = vpop.permute.xlu1 %1313 }
 0x516   :  { %v1319_v39 = vrot.slane %v1314_v7, %v3052_v46 }
 0x518   :  { %v1320_v38 = vsub.f32 %v1273_v40, %v1319_v39  ;;  %v1321_v34 = vsub.f32 %v1275_v12, %v1319_v39 }
 0x51a   :  { %v1322_v54 = vmul.f32 1.442695, %v1320_v38  ;;  %v1324_v11 = vmul.f32 1.442695, %v1321_v34 }
 0x51c   :  { %2345 = vpow2.f32 %v1322_v54 }
 0x51d   :  { %2347 = vpow2.f32 %v1324_v11 }
 0x524   :  { %v1340_v22 = vpop.permute.xlu0 %1339 }
 0x525   :  { %v1345_v63 = vrot.slane %v1340_v22, %v3052_v46 }
 0x526   :  { %v2346_v9 = vpop.eup %2345 }
 0x527   :  { %v2348_v13 = vpop.eup %2347  ;;  %v1328_v29 = vsel %vm1301_vm1, %v2346_v9, 0.0  ;;  %v1346_v40 = vmul.f32 %v1345_v63, %v1336_v5 }
 0x528   :  { %1411 = vmatprep.mubr.f32.mxu0 %v2348_v13  ;;  %v1329_v30 = vsel %vm1301_vm1, %v2348_v13, 0.0 }
 0x529   :  { %1412 = vmatmul.mubr.f32.vlgmr.msra.gmra.mrb[64].mxu0 %v2346_v9  ;;  %v1330_v4 = vadd.f32 %v1329_v30, %v1328_v29 }
 0x52b   :  { %1331 = vadd.xlane.f32.xlu1 %v1330_v4 }
 0x5b8   :  { %v1332_v10 = vpop.xlane.xlu1 %1331 }
 0x5b9   :  { %v1333_v18 = vadd.f32 %v1332_v10, %v1327_v50 }
 0x5bb   :  { %1335 = vst.msk [vmem:[#allocation3] sm:$0x1] %vm86_vm0, %v1333_v18 }
 0x5c2   :  { %v1424_v14 = vld [vmem:[#allocation3] sm:$0x1] }
 0x5c3   :  { %1427 = vperm.xlu1 %2150, %v1424_v14  }
 0x5fc   :  { %v1719_v19 = vpop.f32.mrb[64].mxu0 }
 0x5fd   :  { %v1720_v0 = vpop.f32.mrb[65].mxu0 }
 0x5fe   :  { %v1721_v45 = vadd.f32 %v1720_v0, %v1719_v19 }
 0x600   :  { %v1417_v12 = vadd.f32 %v1721_v45, %v1346_v40 }
 0x602   :  { %1418 = vst [vmem:[#allocation4] sm:$0x1] %v1417_v12 }
 0x609   :  { %v1423_v3 = vld [vmem:[#allocation4] sm:$0x1] }
 0x642   :  { %v1428_v42 = vpop.permute.xlu1 %1427 }
 0x643   :  { %v1433_v51 = vrot.slane %v1428_v42, %v3052_v46 }
 0x645   :  { %2349 = vrcp.f32 %v1433_v51 }
 0x64f   :  { %v2350_v56 = vpop.eup %2349 }
 0x650   :  { %v1435_v2 = vmul.f32 %v2350_v56, %v1423_v3 }
 0x652   :  { %1932 = vmatmul.mubr.f32.vlgmr.msra.gmra.mrb[66].mxu1 %v1435_v2 }
 0x653   :  { %2428 = shalt.err (!%p2425_p0)
}
 0x654   :  { %s2429_s18 = scalar_lea.hbm %s3161_s11, 32 }
 0x655   :  { %p2430_p1 = scmp.ne.s32.totalorder %s3161_s11, %s2429_s18  ;;  %p2433_p2 = scmp.lt.u32.totalorder %s2429_s18, %s3161_s11 }
 0x657   :  { %p2435_p3 = pnand %p2433_p2, %p2430_p1 }
 0x659   :  { %2438 = shalt.err (!%p2435_p3)
}
 0x65a   :  { %1544 = dma.vmem_to_hbm [thread:$0]  %s1542_s13, 32, %s3161_s11, [#allocation14]   ;;  %v1452_v1 = vld [vmem:[%s3159_s9] sm:$0x1]  ;;  %vm1523_vm4 = vcmask 24576  }
 0x65b   :  { %s2483_s23 = smov [#allocation12]  }
 0x65c   :  { %s1531_s1 = sshll.u32 %s2483_s23, 4  ;;  %s1532_s1 = int_to_ptr.vmem [resolvable:$true] %s1531_s1 }
 0x65d   :  { %s2439_s20 = scalar_lea.vmem %s1532_s1, 16  ;;  %s2443_s2 = scalar_lea.vmem %s1532_s1, 32 }
 0x65e   :  { %p2440_p4 = scmp.ne.s32.totalorder %s1532_s1, %s2439_s20  ;;  %p2444_p5 = scmp.lt.s32.totalorder %s1532_s1, %s1532_s1 }
 0x65f   :  { %p2445_p6 = scmp.lt.s32.totalorder %s2443_s2, %s2439_s20 }
 0x661   :  { %p2446_p7 = por %p2445_p6, %p2444_p5 }
 0x663   :  { %p2447_p8 = pnand %p2446_p7, %p2440_p4 }
 0x725   :  { %v1519_v46 = vpop.f32.mrb[66].mxu1 }
 0x726   :  { %v1520_v59 = vadd.f32 %v1519_v46, %v1452_v1  ;;  %v1933_v49 = vpop.f32.mrb[67].mxu1 }
 0x728   :  { %1524 = vst.msk [vmem:[#allocation12] sm:$0x1] %vm1523_vm4, %v1520_v59 }
 0x729   :  { %2450 = shalt.err (!%p2447_p8)
}
 0x72a   :  { %s2451_s9 = scalar_lea.hbm %s3160_s10, 16 }
 0x72b   :  { %p2452_p9 = scmp.ne.s32.totalorder %s3160_s10, %s2451_s9  ;;  %p2455_p10 = scmp.lt.u32.totalorder %s2451_s9, %s3160_s10 }
 0x72d   :  { %p2457_p11 = pnand %p2455_p10, %p2452_p9 }
 0x72f   :  { %2460 = shalt.err (!%p2457_p11)
}
 0x730   :  { %1534 = dma.vmem_to_hbm [thread:$0]  %s1532_s1, 16, %s3160_s10, [#allocation8]  }
 0x731   :  { %2465 = dma.done.wait [#allocation8], 16  }
 0x732   :  { %2466 = vsyncadd [#allocation8], 4294967280 }
 0x733   :  { %2467 = dma.done.wait [#allocation14], 32  }
 0x734   :  { %2468 = vsyncadd [#allocation14], 4294967264 }
 0x735   :  { %1551 = vsyncpa [#allocation7], 1 }
 0x736   :  { %1552 = vsyncpa [#allocation10], 1 }
 0x737   :  { %1553 = vsyncpa [#allocation8], 1 }
 0x738   :  { %1554 = vsyncpa [#allocation14], 1 }

</bundles_post_ra>
